<compile_context>
chip_gen: v5e
topology: v5e:2x2
jax: 0.10.0
libtpu: 0.0.40
codegen_flags: <defaults>
</compile_context>

<pallas_src>
import jax
import jax.numpy as jnp
from jax.experimental import pallas as pl
from jax.experimental.pallas import tpu as pltpu


def _distribution_loss_kernel(im1_ref, im2_ref, dw_ref, sw_ref, sh_ref, ah_ref,
                              out_ref):
    # im*_ref: (B, 3, H, W) f32; band-matrix refs; out_ref: (B, 1, W) f32.
    b_imgs = im1_ref.shape[0]

    # Band matrices: loaded once per grid step, reused for every image.
    d_w = dw_ref[...]   # (W, W) right-multiply: horizontal central difference
    s_w = sw_ref[...]   # (W, W) right-multiply: horizontal [1, 2, 1] smooth
    s_h = sh_ref[...]   # (H, H) left-multiply : vertical   [1, 2, 1] smooth
    a_h = ah_ref[...]   # (H, H) left-multiply : vertical   central difference

    def fmax(a):  # full (H*W) max -> (1, 1)
        return jnp.max(jnp.max(a, axis=1, keepdims=True), axis=0, keepdims=True)

    def fsum(a):  # full (H*W) sum -> (1, 1)
        return jnp.sum(jnp.sum(a, axis=1, keepdims=True), axis=0, keepdims=True)

    def branch_kl(a1, a2):
        # Pointwise KLDivLoss term: target * (log(target) - input)
        #   input  = log_softmax(a1) + 0.001   (stable; scalar log only)
        #   target = softmax(a2)     + 0.001
        sh1 = a1 - fmax(a1)                        # computed once, reused (no CSE in JAX)
        c1 = jnp.log(fsum(jnp.exp(sh1))) - 0.001   # scalar log-denominator with +0.001 folded
        log_in = sh1 - c1
        e2 = jnp.exp(a2 - fmax(a2))
        tgt = e2 * pl.reciprocal(fsum(e2), approx=True) + 0.001
        return tgt * (jnp.log(tgt) - log_in)

    def horizontal_taps(g):
        # Lane-direction 3-tap filters on the MXU (zero padding implicit).
        hdiff = jnp.dot(g, d_w, preferred_element_type=jnp.float32)
        hsm = jnp.dot(g, s_w, preferred_element_type=jnp.float32)
        return hdiff, hsm

    for b in range(b_imgs):  # small static sub-batch, fully unrolled
        # ITU-R 601 luma (rgb2gray is undefined in the PyTorch snippet).
        g1 = 0.299 * im1_ref[b, 0] + 0.587 * im1_ref[b, 1] + 0.114 * im1_ref[b, 2]
        g2 = 0.299 * im2_ref[b, 0] + 0.587 * im2_ref[b, 1] + 0.114 * im2_ref[b, 2]

        hdiff1, hsm1 = horizontal_taps(g1)
        hdiff2, hsm2 = horizontal_taps(g2)

        # x branch first: only hsm1/hsm2 stay live across its KL computation.
        gx1 = jnp.dot(s_h, hdiff1, preferred_element_type=jnp.float32)
        gx2 = jnp.dot(s_h, hdiff2, preferred_element_type=jnp.float32)
        kl = branch_kl(gx1, gx2)

        gy1 = jnp.dot(a_h, hsm1, preferred_element_type=jnp.float32)
        gy2 = jnp.dot(a_h, hsm2, preferred_element_type=jnp.float32)
        kl = kl + branch_kl(gy1, gy2)

        # Lane-dense per-image partial sum: H reduced in-kernel, W + batch in wrapper.
        out_ref[b, :, :] = jnp.sum(kl, axis=0, keepdims=True)


def _sobel_band_matrices(h, w):
    """Tridiagonal band matrices implementing the separable zero-padded Sobel."""
    def smooth(n):   # [1, 2, 1] (symmetric -> same matrix for left/right multiply)
        return (jnp.eye(n, k=-1) + 2.0 * jnp.eye(n) + jnp.eye(n, k=1)).astype(jnp.float32)

    # (g @ d_w)[:, j]   = g[:, j+1] - g[:, j-1]   (zeros outside)
    d_w = (jnp.eye(w, k=-1) - jnp.eye(w, k=1)).astype(jnp.float32)
    s_w = smooth(w)
    s_h = smooth(h)
    # (a_h @ x)[i, :]   = x[i+1, :] - x[i-1, :]   (zeros outside)
    a_h = (jnp.eye(h, k=1) - jnp.eye(h, k=-1)).astype(jnp.float32)
    return d_w, s_w, s_h, a_h


def _vmem_limit_bytes():
    try:
        cap = int(pltpu.get_tpu_info().vmem_capacity_bytes)
    except Exception:
        cap = 64 * 1024 * 1024  # assume the smallest (v7x per-TensorCore VMEM)
    # ~40 MiB on v7x (64 MiB physical), ~80 MiB on v5e/v6e (128 MiB physical);
    # leaves headroom for compiler-internal scratch.
    return max(32 * 1024 * 1024, min(int(cap * 0.625), 100 * 1024 * 1024))


def _pick_sub_batch(n, h, w, vmem_limit):
    """Images per grid step: VMEM-aware, divides N, keeps >= 2 grid steps."""
    # Per-image footprint: 2 inputs x 2 pipeline buffers x 3*H*W f32 (48*H*W B)
    # plus ~16 live (H, W) f32 intermediates (64*H*W B).
    per_image = 112 * h * w
    fixed = 16 * (h * h + w * w) + (2 << 20)  # double-buffered band matrices + slack
    cap = max(1, min(8, max(vmem_limit - fixed, per_image) // per_image))
    best = 1
    for cand in range(2, min(n, cap) + 1):
        if n % cand == 0 and n // cand >= 2:   # >= 2 steps so both v7x TCs get work
            best = cand
    return best


@jax.jit
def distribution_loss(im1, im2):
    """im1, im2: (N, 3, H, W) RGB images. Returns the scalar loss (float32)."""
    n, c, h, w = im1.shape
    assert c == 3, "expects RGB NCHW input"
    im1 = im1.astype(jnp.float32)
    im2 = im2.astype(jnp.float32)

    d_w, s_w, s_h, a_h = _sobel_band_matrices(h, w)

    vmem_limit = _vmem_limit_bytes()
    sub_b = _pick_sub_batch(n, h, w, vmem_limit)
    # TODO(synk): for H*W too large for a (B,3,H,W) f32 block (>= ~512-768^2 on
    # v7x, ~1024^2 on v5e/v6e) add an H-tile grid axis with an online softmax
    # (running max/sum in VMEM scratch) and roll-based vertical taps instead of
    # the (H,H) band matrices.

    partial = pl.pallas_call(
        _distribution_loss_kernel,
        out_shape=jax.ShapeDtypeStruct((n, 1, w), jnp.float32),
        grid_spec=pltpu.PrefetchScalarGridSpec(
            num_scalar_prefetch=0,
            grid=(n // sub_b,),
            in_specs=[
                pl.BlockSpec((sub_b, 3, h, w), lambda i: (i, 0, 0, 0)),
                pl.BlockSpec((sub_b, 3, h, w), lambda i: (i, 0, 0, 0)),
                pl.BlockSpec((w, w), lambda i: (0, 0)),
                pl.BlockSpec((w, w), lambda i: (0, 0)),
                pl.BlockSpec((h, h), lambda i: (0, 0)),
                pl.BlockSpec((h, h), lambda i: (0, 0)),
            ],
            out_specs=pl.BlockSpec((sub_b, 1, w), lambda i: (i, 0, 0)),
        ),
        compiler_params=pltpu.CompilerParams(
            dimension_semantics=("parallel",),
            vmem_limit_bytes=vmem_limit,
        ),
    )(im1, im2, d_w, s_w, s_h, a_h)

    # nn.KLDivLoss(reduction='mean') per branch == sum / (N*H*W); both branches
    # were accumulated together in-kernel, so a single scale covers the sum.
    return jnp.sum(partial) / float(n * h * w)


if __name__ == "__main__":
    key = jax.random.PRNGKey(0)
    k1, k2 = jax.random.split(key)
    # Small, deterministic RGB inputs; W=128 keeps the lane dim aligned/dense.
    im1 = jax.random.uniform(k1, (2, 3, 128, 128), dtype=jnp.float32)
    im2 = jax.random.uniform(k2, (2, 3, 128, 128), dtype=jnp.float32)

    loss = distribution_loss(im1, im2)
    jax.block_until_ready(loss)
    print("KERNEL_OK")
</pallas_src>

<mosaic_0001>
module attributes {stable_mosaic.version = 11 : i64} {
  func.func @_distribution_loss_kernel(%arg0: i32, %arg1: memref<1x3x128x128xf32, #tpu.memory_space<vmem>>, %arg2: memref<1x3x128x128xf32, #tpu.memory_space<vmem>>, %arg3: memref<128x128xf32, #tpu.memory_space<vmem>>, %arg4: memref<128x128xf32, #tpu.memory_space<vmem>>, %arg5: memref<128x128xf32, #tpu.memory_space<vmem>>, %arg6: memref<128x128xf32, #tpu.memory_space<vmem>>, %arg7: memref<1x1x128xf32, #tpu.memory_space<vmem>>) attributes {dimension_semantics = [#tpu.dimension_semantics<parallel>], iteration_bounds = array<i64: 2>, scalar_prefetch = 0 : i64, scratch_operands = 0 : i64, tpu.core_type = #tpu.core_type<tc>, window_params = [{transform_indices = @transform_0, window_bounds = array<i64: 1, 3, 128, 128>}, {transform_indices = @transform_1, window_bounds = array<i64: 1, 3, 128, 128>}, {pipeline_mode = #tpu.pipeline_mode<synchronous>, transform_indices = @transform_2, window_bounds = array<i64: 128, 128>}, {pipeline_mode = #tpu.pipeline_mode<synchronous>, transform_indices = @transform_3, window_bounds = array<i64: 128, 128>}, {pipeline_mode = #tpu.pipeline_mode<synchronous>, transform_indices = @transform_4, window_bounds = array<i64: 128, 128>}, {pipeline_mode = #tpu.pipeline_mode<synchronous>, transform_indices = @transform_5, window_bounds = array<i64: 128, 128>}, {transform_indices = @transform_6, window_bounds = array<i64: 1, 1, 128>}]} {
    %c0 = arith.constant 0 : index
    %c0_0 = arith.constant 0 : index
    %0 = vector.load %arg3[%c0, %c0_0] : memref<128x128xf32, #tpu.memory_space<vmem>>, vector<128x128xf32>
    %c0_1 = arith.constant 0 : index
    %c0_2 = arith.constant 0 : index
    %1 = vector.load %arg4[%c0_1, %c0_2] : memref<128x128xf32, #tpu.memory_space<vmem>>, vector<128x128xf32>
    %c0_3 = arith.constant 0 : index
    %c0_4 = arith.constant 0 : index
    %2 = vector.load %arg5[%c0_3, %c0_4] : memref<128x128xf32, #tpu.memory_space<vmem>>, vector<128x128xf32>
    %c0_5 = arith.constant 0 : index
    %c0_6 = arith.constant 0 : index
    %3 = vector.load %arg6[%c0_5, %c0_6] : memref<128x128xf32, #tpu.memory_space<vmem>>, vector<128x128xf32>
    %c0_7 = arith.constant 0 : index
    %c0_8 = arith.constant 0 : index
    %c0_9 = arith.constant 0 : index
    %c0_10 = arith.constant 0 : index
    %4 = vector.load %arg1[%c0_7, %c0_8, %c0_9, %c0_10] : memref<1x3x128x128xf32, #tpu.memory_space<vmem>>, vector<1x1x128x128xf32>
    %5 = vector.shape_cast %4 : vector<1x1x128x128xf32> to vector<128x128xf32>
    %cst = arith.constant 2.990000e-01 : f32
    %6 = vector.broadcast %cst : f32 to vector<128x128xf32>
    %7 = arith.mulf %6, %5 : vector<128x128xf32>
    %c0_11 = arith.constant 0 : index
    %c1 = arith.constant 1 : index
    %c0_12 = arith.constant 0 : index
    %c0_13 = arith.constant 0 : index
    %8 = vector.load %arg1[%c0_11, %c1, %c0_12, %c0_13] : memref<1x3x128x128xf32, #tpu.memory_space<vmem>>, vector<1x1x128x128xf32>
    %9 = vector.shape_cast %8 : vector<1x1x128x128xf32> to vector<128x128xf32>
    %cst_14 = arith.constant 5.870000e-01 : f32
    %10 = vector.broadcast %cst_14 : f32 to vector<128x128xf32>
    %11 = arith.mulf %10, %9 : vector<128x128xf32>
    %12 = arith.addf %7, %11 : vector<128x128xf32>
    %c0_15 = arith.constant 0 : index
    %c2 = arith.constant 2 : index
    %c0_16 = arith.constant 0 : index
    %c0_17 = arith.constant 0 : index
    %13 = vector.load %arg1[%c0_15, %c2, %c0_16, %c0_17] : memref<1x3x128x128xf32, #tpu.memory_space<vmem>>, vector<1x1x128x128xf32>
    %14 = vector.shape_cast %13 : vector<1x1x128x128xf32> to vector<128x128xf32>
    %cst_18 = arith.constant 1.140000e-01 : f32
    %15 = vector.broadcast %cst_18 : f32 to vector<128x128xf32>
    %16 = arith.mulf %15, %14 : vector<128x128xf32>
    %17 = arith.addf %12, %16 : vector<128x128xf32>
    %c0_19 = arith.constant 0 : index
    %c0_20 = arith.constant 0 : index
    %c0_21 = arith.constant 0 : index
    %c0_22 = arith.constant 0 : index
    %18 = vector.load %arg2[%c0_19, %c0_20, %c0_21, %c0_22] : memref<1x3x128x128xf32, #tpu.memory_space<vmem>>, vector<1x1x128x128xf32>
    %19 = vector.shape_cast %18 : vector<1x1x128x128xf32> to vector<128x128xf32>
    %cst_23 = arith.constant 2.990000e-01 : f32
    %20 = vector.broadcast %cst_23 : f32 to vector<128x128xf32>
    %21 = arith.mulf %20, %19 : vector<128x128xf32>
    %c0_24 = arith.constant 0 : index
    %c1_25 = arith.constant 1 : index
    %c0_26 = arith.constant 0 : index
    %c0_27 = arith.constant 0 : index
    %22 = vector.load %arg2[%c0_24, %c1_25, %c0_26, %c0_27] : memref<1x3x128x128xf32, #tpu.memory_space<vmem>>, vector<1x1x128x128xf32>
    %23 = vector.shape_cast %22 : vector<1x1x128x128xf32> to vector<128x128xf32>
    %cst_28 = arith.constant 5.870000e-01 : f32
    %24 = vector.broadcast %cst_28 : f32 to vector<128x128xf32>
    %25 = arith.mulf %24, %23 : vector<128x128xf32>
    %26 = arith.addf %21, %25 : vector<128x128xf32>
    %c0_29 = arith.constant 0 : index
    %c2_30 = arith.constant 2 : index
    %c0_31 = arith.constant 0 : index
    %c0_32 = arith.constant 0 : index
    %27 = vector.load %arg2[%c0_29, %c2_30, %c0_31, %c0_32] : memref<1x3x128x128xf32, #tpu.memory_space<vmem>>, vector<1x1x128x128xf32>
    %28 = vector.shape_cast %27 : vector<1x1x128x128xf32> to vector<128x128xf32>
    %cst_33 = arith.constant 1.140000e-01 : f32
    %29 = vector.broadcast %cst_33 : f32 to vector<128x128xf32>
    %30 = arith.mulf %29, %28 : vector<128x128xf32>
    %31 = arith.addf %26, %30 : vector<128x128xf32>
    %cst_34 = arith.constant dense<0.000000e+00> : vector<128x128xf32>
    %32 = tpu.matmul %17, %0, %cst_34 {dimension_numbers = #tpu.dot_dimension_numbers<[1], [0], [0], [1], [0, 0, 1, 1], [], []>} : vector<128x128xf32>, vector<128x128xf32>, vector<128x128xf32> -> vector<128x128xf32>
    %cst_35 = arith.constant dense<0.000000e+00> : vector<128x128xf32>
    %33 = tpu.matmul %17, %1, %cst_35 {dimension_numbers = #tpu.dot_dimension_numbers<[1], [0], [0], [1], [0, 0, 1, 1], [], []>} : vector<128x128xf32>, vector<128x128xf32>, vector<128x128xf32> -> vector<128x128xf32>
    %cst_36 = arith.constant dense<0.000000e+00> : vector<128x128xf32>
    %34 = tpu.matmul %31, %0, %cst_36 {dimension_numbers = #tpu.dot_dimension_numbers<[1], [0], [0], [1], [0, 0, 1, 1], [], []>} : vector<128x128xf32>, vector<128x128xf32>, vector<128x128xf32> -> vector<128x128xf32>
    %cst_37 = arith.constant dense<0.000000e+00> : vector<128x128xf32>
    %35 = tpu.matmul %31, %1, %cst_37 {dimension_numbers = #tpu.dot_dimension_numbers<[1], [0], [0], [1], [0, 0, 1, 1], [], []>} : vector<128x128xf32>, vector<128x128xf32>, vector<128x128xf32> -> vector<128x128xf32>
    %cst_38 = arith.constant dense<0.000000e+00> : vector<128x128xf32>
    %36 = tpu.matmul %2, %32, %cst_38 {dimension_numbers = #tpu.dot_dimension_numbers<[1], [0], [0], [1], [0, 0, 1, 1], [], []>} : vector<128x128xf32>, vector<128x128xf32>, vector<128x128xf32> -> vector<128x128xf32>
    %cst_39 = arith.constant dense<0.000000e+00> : vector<128x128xf32>
    %37 = tpu.matmul %2, %34, %cst_39 {dimension_numbers = #tpu.dot_dimension_numbers<[1], [0], [0], [1], [0, 0, 1, 1], [], []>} : vector<128x128xf32>, vector<128x128xf32>, vector<128x128xf32> -> vector<128x128xf32>
    %cst_40 = arith.constant dense<0xFF800000> : vector<128xf32>
    %38 = vector.multi_reduction <maximumf>, %36, %cst_40 [1] : vector<128x128xf32> to vector<128xf32>
    %39 = vector.shape_cast %38 : vector<128xf32> to vector<128x1xf32>
    %cst_41 = arith.constant dense<0xFF800000> : vector<1xf32>
    %40 = vector.multi_reduction <maximumf>, %39, %cst_41 [0] : vector<128x1xf32> to vector<1xf32>
    %41 = vector.shape_cast %40 : vector<1xf32> to vector<1x1xf32>
    %42 = vector.broadcast %41 : vector<1x1xf32> to vector<128x128xf32>
    %43 = arith.subf %36, %42 : vector<128x128xf32>
    %44 = math.exp %43 : vector<128x128xf32>
    %cst_42 = arith.constant dense<0.000000e+00> : vector<128xf32>
    %45 = vector.multi_reduction <add>, %44, %cst_42 [1] : vector<128x128xf32> to vector<128xf32>
    %46 = vector.shape_cast %45 : vector<128xf32> to vector<128x1xf32>
    %cst_43 = arith.constant dense<0.000000e+00> : vector<1xf32>
    %47 = vector.multi_reduction <add>, %46, %cst_43 [0] : vector<128x1xf32> to vector<1xf32>
    %48 = vector.shape_cast %47 : vector<1xf32> to vector<1x1xf32>
    %49 = math.log %48 : vector<1x1xf32>
    %cst_44 = arith.constant 1.000000e-03 : f32
    %50 = vector.broadcast %cst_44 : f32 to vector<1x1xf32>
    %51 = arith.subf %49, %50 : vector<1x1xf32>
    %52 = vector.broadcast %51 : vector<1x1xf32> to vector<128x128xf32>
    %53 = arith.subf %43, %52 : vector<128x128xf32>
    %cst_45 = arith.constant dense<0xFF800000> : vector<128xf32>
    %54 = vector.multi_reduction <maximumf>, %37, %cst_45 [1] : vector<128x128xf32> to vector<128xf32>
    %55 = vector.shape_cast %54 : vector<128xf32> to vector<128x1xf32>
    %cst_46 = arith.constant dense<0xFF800000> : vector<1xf32>
    %56 = vector.multi_reduction <maximumf>, %55, %cst_46 [0] : vector<128x1xf32> to vector<1xf32>
    %57 = vector.shape_cast %56 : vector<1xf32> to vector<1x1xf32>
    %58 = vector.broadcast %57 : vector<1x1xf32> to vector<128x128xf32>
    %59 = arith.subf %37, %58 : vector<128x128xf32>
    %60 = math.exp %59 : vector<128x128xf32>
    %cst_47 = arith.constant dense<0.000000e+00> : vector<128xf32>
    %61 = vector.multi_reduction <add>, %60, %cst_47 [1] : vector<128x128xf32> to vector<128xf32>
    %62 = vector.shape_cast %61 : vector<128xf32> to vector<128x1xf32>
    %cst_48 = arith.constant dense<0.000000e+00> : vector<1xf32>
    %63 = vector.multi_reduction <add>, %62, %cst_48 [0] : vector<128x1xf32> to vector<1xf32>
    %64 = vector.shape_cast %63 : vector<1xf32> to vector<1x1xf32>
    %65 = tpu.reciprocal %64 {approx = true} : vector<1x1xf32> -> vector<1x1xf32>
    %66 = vector.broadcast %65 : vector<1x1xf32> to vector<128x128xf32>
    %67 = arith.mulf %60, %66 : vector<128x128xf32>
    %cst_49 = arith.constant 1.000000e-03 : f32
    %68 = vector.broadcast %cst_49 : f32 to vector<128x128xf32>
    %69 = arith.addf %67, %68 : vector<128x128xf32>
    %70 = math.log %69 : vector<128x128xf32>
    %71 = arith.subf %70, %53 : vector<128x128xf32>
    %72 = arith.mulf %69, %71 : vector<128x128xf32>
    %cst_50 = arith.constant dense<0.000000e+00> : vector<128x128xf32>
    %73 = tpu.matmul %3, %33, %cst_50 {dimension_numbers = #tpu.dot_dimension_numbers<[1], [0], [0], [1], [0, 0, 1, 1], [], []>} : vector<128x128xf32>, vector<128x128xf32>, vector<128x128xf32> -> vector<128x128xf32>
    %cst_51 = arith.constant dense<0.000000e+00> : vector<128x128xf32>
    %74 = tpu.matmul %3, %35, %cst_51 {dimension_numbers = #tpu.dot_dimension_numbers<[1], [0], [0], [1], [0, 0, 1, 1], [], []>} : vector<128x128xf32>, vector<128x128xf32>, vector<128x128xf32> -> vector<128x128xf32>
    %cst_52 = arith.constant dense<0xFF800000> : vector<128xf32>
    %75 = vector.multi_reduction <maximumf>, %73, %cst_52 [1] : vector<128x128xf32> to vector<128xf32>
    %76 = vector.shape_cast %75 : vector<128xf32> to vector<128x1xf32>
    %cst_53 = arith.constant dense<0xFF800000> : vector<1xf32>
    %77 = vector.multi_reduction <maximumf>, %76, %cst_53 [0] : vector<128x1xf32> to vector<1xf32>
    %78 = vector.shape_cast %77 : vector<1xf32> to vector<1x1xf32>
    %79 = vector.broadcast %78 : vector<1x1xf32> to vector<128x128xf32>
    %80 = arith.subf %73, %79 : vector<128x128xf32>
    %81 = math.exp %80 : vector<128x128xf32>
    %cst_54 = arith.constant dense<0.000000e+00> : vector<128xf32>
    %82 = vector.multi_reduction <add>, %81, %cst_54 [1] : vector<128x128xf32> to vector<128xf32>
    %83 = vector.shape_cast %82 : vector<128xf32> to vector<128x1xf32>
    %cst_55 = arith.constant dense<0.000000e+00> : vector<1xf32>
    %84 = vector.multi_reduction <add>, %83, %cst_55 [0] : vector<128x1xf32> to vector<1xf32>
    %85 = vector.shape_cast %84 : vector<1xf32> to vector<1x1xf32>
    %86 = math.log %85 : vector<1x1xf32>
    %cst_56 = arith.constant 1.000000e-03 : f32
    %87 = vector.broadcast %cst_56 : f32 to vector<1x1xf32>
    %88 = arith.subf %86, %87 : vector<1x1xf32>
    %89 = vector.broadcast %88 : vector<1x1xf32> to vector<128x128xf32>
    %90 = arith.subf %80, %89 : vector<128x128xf32>
    %cst_57 = arith.constant dense<0xFF800000> : vector<128xf32>
    %91 = vector.multi_reduction <maximumf>, %74, %cst_57 [1] : vector<128x128xf32> to vector<128xf32>
    %92 = vector.shape_cast %91 : vector<128xf32> to vector<128x1xf32>
    %cst_58 = arith.constant dense<0xFF800000> : vector<1xf32>
    %93 = vector.multi_reduction <maximumf>, %92, %cst_58 [0] : vector<128x1xf32> to vector<1xf32>
    %94 = vector.shape_cast %93 : vector<1xf32> to vector<1x1xf32>
    %95 = vector.broadcast %94 : vector<1x1xf32> to vector<128x128xf32>
    %96 = arith.subf %74, %95 : vector<128x128xf32>
    %97 = math.exp %96 : vector<128x128xf32>
    %cst_59 = arith.constant dense<0.000000e+00> : vector<128xf32>
    %98 = vector.multi_reduction <add>, %97, %cst_59 [1] : vector<128x128xf32> to vector<128xf32>
    %99 = vector.shape_cast %98 : vector<128xf32> to vector<128x1xf32>
    %cst_60 = arith.constant dense<0.000000e+00> : vector<1xf32>
    %100 = vector.multi_reduction <add>, %99, %cst_60 [0] : vector<128x1xf32> to vector<1xf32>
    %101 = vector.shape_cast %100 : vector<1xf32> to vector<1x1xf32>
    %102 = tpu.reciprocal %101 {approx = true} : vector<1x1xf32> -> vector<1x1xf32>
    %103 = vector.broadcast %102 : vector<1x1xf32> to vector<128x128xf32>
    %104 = arith.mulf %97, %103 : vector<128x128xf32>
    %cst_61 = arith.constant 1.000000e-03 : f32
    %105 = vector.broadcast %cst_61 : f32 to vector<128x128xf32>
    %106 = arith.addf %104, %105 : vector<128x128xf32>
    %107 = math.log %106 : vector<128x128xf32>
    %108 = arith.subf %107, %90 : vector<128x128xf32>
    %109 = arith.mulf %106, %108 : vector<128x128xf32>
    %110 = arith.addf %72, %109 : vector<128x128xf32>
    %cst_62 = arith.constant dense<0.000000e+00> : vector<128xf32>
    %111 = vector.multi_reduction <add>, %110, %cst_62 [0] : vector<128x128xf32> to vector<128xf32>
    %112 = vector.shape_cast %111 : vector<128xf32> to vector<1x128xf32>
    %c0_63 = arith.constant 0 : index
    %c0_64 = arith.constant 0 : index
    %c0_65 = arith.constant 0 : index
    %113 = vector.load %arg7[%c0_63, %c0_64, %c0_65] : memref<1x1x128xf32, #tpu.memory_space<vmem>>, vector<1x1x128xf32>
    %114 = vector.shape_cast %113 : vector<1x1x128xf32> to vector<1x128xf32>
    %115 = vector.shape_cast %112 : vector<1x128xf32> to vector<1x1x128xf32>
    tpu.vector_store %arg7[%c0_63, %c0_64, %c0_65], %115 {strides = array<i32>} : memref<1x1x128xf32, #tpu.memory_space<vmem>>, vector<1x1x128xf32>,
    return
  }
  func.func @transform_0(%arg0: i32) -> (i32, i32, i32, i32) {
    %c0_i32 = arith.constant 0 : i32
    %c0_i32_0 = arith.constant 0 : i32
    %c0_i32_1 = arith.constant 0 : i32
    %c0_i32_2 = arith.constant 0 : i32
    return %arg0, %c0_i32, %c0_i32_0, %c0_i32_1 : i32, i32, i32, i32
  }
  func.func @transform_1(%arg0: i32) -> (i32, i32, i32, i32) {
    %c0_i32 = arith.constant 0 : i32
    %c0_i32_0 = arith.constant 0 : i32
    %c0_i32_1 = arith.constant 0 : i32
    %c0_i32_2 = arith.constant 0 : i32
    return %arg0, %c0_i32, %c0_i32_0, %c0_i32_1 : i32, i32, i32, i32
  }
  func.func @transform_2(%arg0: i32) -> (i32, i32) {
    %c0_i32 = arith.constant 0 : i32
    %c0_i32_0 = arith.constant 0 : i32
    %c0_i32_1 = arith.constant 0 : i32
    return %c0_i32, %c0_i32_0 : i32, i32
  }
  func.func @transform_3(%arg0: i32) -> (i32, i32) {
    %c0_i32 = arith.constant 0 : i32
    %c0_i32_0 = arith.constant 0 : i32
    %c0_i32_1 = arith.constant 0 : i32
    return %c0_i32, %c0_i32_0 : i32, i32
  }
  func.func @transform_4(%arg0: i32) -> (i32, i32) {
    %c0_i32 = arith.constant 0 : i32
    %c0_i32_0 = arith.constant 0 : i32
    %c0_i32_1 = arith.constant 0 : i32
    return %c0_i32, %c0_i32_0 : i32, i32
  }
  func.func @transform_5(%arg0: i32) -> (i32, i32) {
    %c0_i32 = arith.constant 0 : i32
    %c0_i32_0 = arith.constant 0 : i32
    %c0_i32_1 = arith.constant 0 : i32
    return %c0_i32, %c0_i32_0 : i32, i32
  }
  func.func @transform_6(%arg0: i32) -> (i32, i32, i32) {
    %c0_i32 = arith.constant 0 : i32
    %c0_i32_0 = arith.constant 0 : i32
    %c0_i32_1 = arith.constant 0 : i32
    return %arg0, %c0_i32, %c0_i32_0 : i32, i32, i32
  }
}

</mosaic_0001>

<bundles_post_ra>
// kernel: distribution_loss.1
= control target key start
LH: loop header
LB: loop body
LE: loop exit
PB: predicated region body
PF: predicated region fallthrough
CT: control target
= control target key end

     0   :  { %s4037_s0 = inlined_call_operand.hbm [shape: f32[2,3,128,128], index: 0, kind: input, shape index: {}]   ;;  %s4038_s1 = inlined_call_operand.hbm [shape: f32[2,3,128,128], index: 1, kind: input, shape index: {}]   ;;  %s4039_s2 = inlined_call_operand.vmem [shape: f32[128,128], index: 2, kind: input, shape index: {}]   ;;  %s4040_s3 = inlined_call_operand.vmem [shape: f32[128,128], index: 3, kind: input, shape index: {}, may-alias: {3,4}]   ;;  %s4041_s4 = inlined_call_operand.vmem [shape: f32[128,128], index: 4, kind: input, shape index: {}, may-alias: {3,4}]   ;;  %s4042_s5 = inlined_call_operand.vmem [shape: f32[128,128], index: 5, kind: input, shape index: {}]   ;;  %s4043_s6 = inlined_call_operand.vmem [shape: f32[2,1,128], index: 6, kind: output, shape index: {}]  }
   0x1   :  { %4140 = sst [smem:[#allocation56_spill]] %s4037_s0 }
   0x2   :  { %11 = vsyncpa [#allocation3], 0 }
   0x3   :  { %13 = vsyncpa [#allocation3 + $0x1], 0 }
   0x4   :  { %14 = vsyncpa [#allocation5], 0 }
   0x5   :  { %16 = vsyncpa [#allocation5 + $0x1], 0  ;;  %s2586_s21 = smov 0   ;;  %s2588_s22 = smov 0  }
   0x6   :  { %s2590_s23 = smov 0   ;;  %s2592_s24 = smov 0  }
   0x7 LB: > { %s2605_s25 = sadd.s32 4294967295, %s2547_s24   ;;  %s2608_s26 = sadd.s32 1, %s2547_s24   ;;  %s2547_s24 = sphi %s2592_s24, %s4336_s24   ;;  %s2543_s23 = sphi %s2590_s23, %s4335_s23   ;;  %s2539_s22 = sphi %s2588_s22, %s4334_s22   ;;  %s2535_s21 = sphi %s2586_s21, %s4333_s21  }
   0x8   : > { %s26_s27 = ssub.s32 %s2547_s24, %s2608_s26  ;;  %s29_s28 = sadd.s32 1, %s2543_s23 }
   0x9   : > { %p27_p0 = scmp.eq.s32.totalorder %s26_s27, 0  ;;  %p36_p1 = scmp.ne.s32.totalorder %s2543_s23, %s2539_s22 }
   0xa   : > { %p37_p2 = scmp.eq.s32.totalorder %s2547_s24, 0  ;;  %p42_p3 = scmp.ne.s32.totalorder %s2539_s22, %s2535_s21 }
   0xb   : > { %s2618_s29 = scalar_select %p27_p0, %s2543_s23, %s29_s28  }
   0xc   : > { %p38_p4 = por %p37_p2, %p36_p1  ;;  %p43_p5 = scmp.eq.s32.totalorder %s2605_s25, 0 }
   0xd   : > { %p2214_p6 = scmp.lt.s32.totalorder %s2547_s24, 2  ;;  %s2627_s7 = sand.u32 1, %s2543_s23  }
   0xe   : > { %p2622_p7 = por %p43_p5, %p42_p3  ;;  %s2198_s8 = smul.u32 384, %s2627_s7 }
   0xf   : > { %s2199_s9 = smul.u32 384, %s2547_s24  ;;  %p2631_p8 = pnand %p2214_p6, %p38_p4 }
  0x10   : > { %s4143_s0 = sld [smem:[#allocation56_spill]]  ;;  %s218_s14 = scalar_lea.vmem [#allocation2], %s2198_s8 }
  0x11   : > { %s226_s15 = sshll.u32 %s218_s14, 4  ;;  %p2129_p9 = scmp.ge.s32.totalorder %s2547_s24, 1  ;;  %s227_s15 = int_to_ptr.vmem [resolvable:$true] %s226_s15 }
  0x12   : > { %s215_s17 = scalar_lea.sflag [#allocation3], %s2627_s7  ;;  %p2453_p11 = pneg %p2631_p8 }
  0x16   : > { %s223_s13 = scalar_lea.hbm %s4143_s0, %s2199_s9  ;;  %s2456_s27 = scalar_lea.hbm %s4143_s0, 768 }
  0x17   : > { %s224_s16 = sshll.u32 %s223_s13, 4  ;;  %s225_s16 = int_to_ptr.hbm [resolvable:$true] %s224_s16 }
  0x18   : > { %s2449_s18 = sshra.s32 %s225_s16, 4  ;;  %s2450_s18 = int_to_ptr.hbm [resolvable:$true] %s2449_s18 }
  0x19   : > { %s2451_s19 = scalar_lea.hbm %s2450_s18, 384  ;;  %p2457_p0 = scmp.lt.s32.totalorder %s2450_s18, %s4143_s0 }
  0x1a   : > { %p2452_p10 = scmp.ne.s32.totalorder %s2450_s18, %s2451_s19  ;;  %p2458_p1 = scmp.lt.s32.totalorder %s2456_s27, %s2451_s19 }
  0x1c   : > { %p2454_p12 = pnand %p2453_p11, %p2452_p10  ;;  %p2459_p2 = por %p2458_p1, %p2457_p0 }
  0x1e   : > { %p2455_p13 = pneg %p2454_p12 }
  0x20   : > { %p2460_p3 = pnand %p2459_p2, %p2455_p13 }
  0x22   : > { %2463 = shalt.err (!%p2460_p3)
}
  0x23   : > { %s2549_s12 = smov 128   ;;  %s2550_s13 = smov 8  }
  0x24   : > { %2210 = dma.hbm_to_vmem [thread:$0]  (!%p2631_p8), %s225_s16, 6144, %s227_s15, %s215_s17, %s2549_s12, %s2549_s12, %s2550_s13  }
  0x25   : > { %p256_p4 = scmp.lt.s32.totalorder %s2547_s24, 3  ;;  %s245_s18 = scalar_lea.hbm %s4038_s1, %s2199_s9 }
  0x26   : > { %s246_s21 = sshll.u32 %s245_s18, 4  ;;  %s240_s27 = scalar_lea.vmem [#allocation4], %s2198_s8  ;;  %s247_s21 = int_to_ptr.hbm [resolvable:$true] %s246_s21 }
  0x27   : > { %p2665_p5 = pnand %p2129_p9, %p256_p4  ;;  %s248_s28 = sshll.u32 %s240_s27, 4  ;;  %s249_s28 = int_to_ptr.vmem [resolvable:$true] %s248_s28 }
  0x28   : > { %s237_s11 = scalar_lea.sflag [#allocation5], %s2627_s7  ;;  %s2479_s0 = sshra.s32 %s247_s21, 4  ;;  %s2480_s0 = int_to_ptr.hbm [resolvable:$true] %s2479_s0 }
  0x29   : > { %s2481_s15 = scalar_lea.hbm %s2480_s0, 384  ;;  %s2486_s16 = scalar_lea.hbm %s4038_s1, 768 }
  0x2a   : > { %p2482_p6 = scmp.ne.s32.totalorder %s2480_s0, %s2481_s15  ;;  %p2487_p9 = scmp.lt.s32.totalorder %s2480_s0, %s4038_s1 }
  0x2b   : > { %p2488_p13 = scmp.lt.s32.totalorder %s2486_s16, %s2481_s15 }
  0x2c   : > { %p2484_p10 = pnand %p2482_p6, %p2453_p11 }
  0x2d   : > { %p2489_p0 = por %p2488_p13, %p2487_p9 }
  0x2e   : > { %p2485_p12 = pneg %p2484_p10 }
  0x30   : > { %p2490_p1 = pnand %p2489_p0, %p2485_p12 }
  0x32   : > { %2493 = shalt.err (!%p2490_p1)
}
  0x33   : > { %2213 = dma.hbm_to_vmem [thread:$0]  (!%p2631_p8), %s247_s21, 6144, %s249_s28, %s237_s11, %s2549_s12, %s2549_s12, %s2550_s13  }
  0x34   : > { %260 = sbr.rel (%p2665_p5) target bundleno = 1189 (0x4a5), region = 44 }
  0x39   : > { %s262_s7 = sand.u32 1, %s2539_s22  }
  0x3a   : > { %s2202_s8 = smul.u32 384, %s262_s7  ;;  %s263_s20 = scalar_lea.sflag [#allocation3], %s262_s7 }
  0x3c   : > { %s2686_s18 = scalar_lea.vmem [#allocation2], %s2202_s8 }
  0x3d   : > { %2526 = dma.done.wait (%p2622_p7), %s263_s20, 6144  }
  0x3e   : > { %2528 = vsyncadd (%p2622_p7), %s263_s20, 4294961152  ;;  %s273_s0 = scalar_lea.sflag [#allocation5], %s262_s7  ;;  %s2692_s27 = scalar_lea.vmem [#allocation4], %s2202_s8 }
  0x3f   : > { %2530 = dma.done.wait (%p2622_p7), %s273_s0, 6144  }
  0x40   : > { %2532 = vsyncadd (%p2622_p7), %s273_s0, 4294961152  ;;  %v327_v0 = vld [vmem:[%s4039_s2 + $0x78] sm:$0xff]  ;;  %v326_v2 = vld [vmem:[%s4039_s2 + $0x70] sm:$0xff]  ;;  %p309_p7 = scmp.lt.s32.totalorder %s2605_s25, 1 }
  0x41   : > { %v343_v1 = vld [vmem:[%s4040_s3 + $0x78] sm:$0xff]  ;;  %636 = vmatpush.msra.mxu0 %v327_v0  ;;  %v342_v3 = vld [vmem:[%s4040_s3 + $0x70] sm:$0xff]  ;;  %766 = vmatpush.msra.mxu2 %v327_v0  ;;  %v325_v4 = vld [vmem:[%s4039_s2 + $0x68] sm:$0xff] }
  0x42   : > { %701 = vmatpush.msra.mxu1 %v343_v1  ;;  %831 = vmatpush.msra.mxu3 %v343_v1  ;;  %v341_v5 = vld [vmem:[%s4040_s3 + $0x68] sm:$0xff]  ;;  %v324_v6 = vld [vmem:[%s4039_s2 + $0x60] sm:$0xff]  ;;  %v323_v8 = vld [vmem:[%s4039_s2 + $0x58] sm:$0xff]  ;;  %s4338_s25 = smov (!%p309_p7, %s2605_s25), 1 }
  0x43   : > { %637 = vmatpush.msra.mxu0 %v326_v2  ;;  %767 = vmatpush.msra.mxu2 %v326_v2  ;;  %v340_v7 = vld [vmem:[%s4040_s3 + $0x60] sm:$0xff]  ;;  %v339_v9 = vld [vmem:[%s4040_s3 + $0x58] sm:$0xff]  ;;  %v322_v10 = vld [vmem:[%s4039_s2 + $0x50] sm:$0xff]  ;;  %s311_s7 = scalar_lea.vmem %s4043_s6, %s4338_s25 }
  0x44   : > { %702 = vmatpush.msra.mxu1 %v342_v3  ;;  %832 = vmatpush.msra.mxu3 %v342_v3  ;;  %v338_v11 = vld [vmem:[%s4040_s3 + $0x50] sm:$0xff]  ;;  %v321_v12 = vld [vmem:[%s4039_s2 + $0x48] sm:$0xff]  ;;  %v320_v14 = vld [vmem:[%s4039_s2 + $0x40] sm:$0xff] }
  0x45   : > { %638 = vmatpush.msra.mxu0 %v325_v4  ;;  %768 = vmatpush.msra.mxu2 %v325_v4  ;;  %v337_v13 = vld [vmem:[%s4040_s3 + $0x48] sm:$0xff]  ;;  %v336_v15 = vld [vmem:[%s4040_s3 + $0x40] sm:$0xff]  ;;  %v319_v16 = vld [vmem:[%s4039_s2 + $0x38] sm:$0xff] }
  0x46   : > { %703 = vmatpush.msra.mxu1 %v341_v5  ;;  %833 = vmatpush.msra.mxu3 %v341_v5  ;;  %v335_v17 = vld [vmem:[%s4040_s3 + $0x38] sm:$0xff]  ;;  %v318_v18 = vld [vmem:[%s4039_s2 + $0x30] sm:$0xff]  ;;  %v317_v20 = vld [vmem:[%s4039_s2 + $0x28] sm:$0xff] }
  0x47   : > { %639 = vmatpush.msra.mxu0 %v324_v6  ;;  %769 = vmatpush.msra.mxu2 %v324_v6  ;;  %v334_v19 = vld [vmem:[%s4040_s3 + $0x30] sm:$0xff]  ;;  %v333_v21 = vld [vmem:[%s4040_s3 + $0x28] sm:$0xff]  ;;  %v376_v22 = vld [vmem:[%s2686_s18] sm:$0xff] }
  0x48   : > { %704 = vmatpush.msra.mxu1 %v340_v7  ;;  %834 = vmatpush.msra.mxu3 %v340_v7  ;;  %v2130_v23 = vld [vmem:[%s2686_s18 + $0x80] sm:$0xff]  ;;  %v315_v28 = vld [vmem:[%s4039_s2 + $0x18] sm:$0xff]  ;;  %v392_v29 = vmul.f32 0.299, %v376_v22  ;;  %v314_v36 = vld [vmem:[%s4039_s2 + $0x10] sm:$0xff] }
  0x49   : > { %640 = vmatpush.msra.mxu0 %v323_v8  ;;  %770 = vmatpush.msra.mxu2 %v323_v8  ;;  %v506_v24 = vld [vmem:[%s2692_s27] sm:$0xff]  ;;  %v425_v30 = vmul.f32 0.587, %v2130_v23  ;;  %v331_v31 = vld [vmem:[%s4040_s3 + $0x18] sm:$0xff]  ;;  %v330_v37 = vld [vmem:[%s4040_s3 + $0x10] sm:$0xff] }
  0x4a   : > { %705 = vmatpush.msra.mxu1 %v339_v9  ;;  %835 = vmatpush.msra.mxu3 %v339_v9  ;;  %v2162_v25 = vld [vmem:[%s2692_s27 + $0x80] sm:$0xff]  ;;  %v522_v33 = vmul.f32 0.299, %v506_v24  ;;  %v313_v38 = vld [vmem:[%s4039_s2 + $0x8] sm:$0xff]  ;;  %v378_v62 = vld [vmem:[%s2686_s18 + $0x10] sm:$0xff] }
  0x4b   : > { %641 = vmatpush.msra.mxu0 %v322_v10  ;;  %771 = vmatpush.msra.mxu2 %v322_v10  ;;  %v316_v26 = vld [vmem:[%s4039_s2 + $0x20] sm:$0xff]  ;;  %v555_v34 = vmul.f32 0.587, %v2162_v25  ;;  %v441_v39 = vadd.f32 %v425_v30, %v392_v29  ;;  %v329_v41 = vld [vmem:[%s4040_s3 + $0x8] sm:$0xff]  ;;  %v2132_v63 = vld [vmem:[%s2686_s18 + $0x90] sm:$0xff] }
  0x4c   : > { %706 = vmatpush.msra.mxu1 %v338_v11  ;;  %836 = vmatpush.msra.mxu3 %v338_v11  ;;  %v332_v27 = vld [vmem:[%s4040_s3 + $0x20] sm:$0xff]  ;;  %v377_v44 = vld [vmem:[%s2686_s18 + $0x8] sm:$0xff]  ;;  %v508_v0 = vld [vmem:[%s2692_s27 + $0x10] sm:$0xff]  ;;  %v394_v3 = vmul.f32 0.299, %v378_v62 }
  0x4d   : > { %642 = vmatpush.msra.mxu0 %v321_v12  ;;  %772 = vmatpush.msra.mxu2 %v321_v12  ;;  %v2146_v32 = vld [vmem:[%s2686_s18 + $0x100] sm:$0xff]  ;;  %v571_v42 = vadd.f32 %v555_v34, %v522_v33  ;;  %v2131_v45 = vld [vmem:[%s2686_s18 + $0x88] sm:$0xff]  ;;  %v393_v51 = vmul.f32 0.299, %v377_v44  ;;  %v2164_v1 = vld [vmem:[%s2692_s27 + $0x90] sm:$0xff] }
  0x4e   : > { %707 = vmatpush.msra.mxu1 %v337_v13  ;;  %837 = vmatpush.msra.mxu3 %v337_v13  ;;  %v2178_v35 = vld [vmem:[%s2692_s27 + $0x100] sm:$0xff]  ;;  %v474_v40 = vmul.f32 0.114, %v2146_v32  ;;  %v507_v46 = vld [vmem:[%s2692_s27 + $0x8] sm:$0xff]  ;;  %v426_v52 = vmul.f32 0.587, %v2131_v45 }
  0x4f   : > { %643 = vmatpush.msra.mxu0 %v320_v14  ;;  %773 = vmatpush.msra.mxu2 %v320_v14  ;;  %v604_v43 = vmul.f32 0.114, %v2178_v35  ;;  %v2163_v47 = vld [vmem:[%s2692_s27 + $0x88] sm:$0xff]  ;;  %v312_v48 = vld [vmem:[%s4039_s2] sm:$0xff]  ;;  %v523_v55 = vmul.f32 0.299, %v507_v46 }
  0x50   : > { %708 = vmatpush.msra.mxu1 %v336_v15  ;;  %838 = vmatpush.msra.mxu3 %v336_v15  ;;  %v328_v49 = vld [vmem:[%s4040_s3] sm:$0xff]  ;;  %v490_v50 = vadd.f32 %v474_v40, %v441_v39  ;;  %v2147_v54 = vld [vmem:[%s2686_s18 + $0x108] sm:$0xff]  ;;  %v556_v56 = vmul.f32 0.587, %v2163_v47  ;;  %v442_v58 = vadd.f32 %v426_v52, %v393_v51  ;;  %v427_v4 = vmul.f32 0.587, %v2132_v63 }
  0x51   : > { %644 = vmatpush.msra.mxu0 %v319_v16  ;;  %774 = vmatpush.msra.mxu2 %v319_v16  ;;  %v620_v53 = vadd.f32 %v604_v43, %v571_v42  ;;  %v2179_v57 = vld [vmem:[%s2692_s27 + $0x108] sm:$0xff]  ;;  %v475_v59 = vmul.f32 0.114, %v2147_v54  ;;  %v2148_v6 = vld [vmem:[%s2686_s18 + $0x110] sm:$0xff]  ;;  %v524_v7 = vmul.f32 0.299, %v508_v0 }
  0x52   : > { %709 = vmatpush.msra.mxu1 %v335_v17  ;;  %839 = vmatpush.msra.mxu3 %v335_v17  ;;  %v572_v60 = vadd.f32 %v556_v56, %v523_v55  ;;  %v605_v61 = vmul.f32 0.114, %v2179_v57  ;;  %v557_v8 = vmul.f32 0.587, %v2164_v1  ;;  %v2180_v9 = vld [vmem:[%s2692_s27 + $0x110] sm:$0xff]  ;;  %v443_v10 = vadd.f32 %v427_v4, %v394_v3  ;;  %v379_v14 = vld [vmem:[%s2686_s18 + $0x18] sm:$0xff] }
  0x53   : > { %645 = vmatpush.msra.mxu0 %v318_v18  ;;  %775 = vmatpush.msra.mxu2 %v318_v18  ;;  %v491_v2 = vadd.f32 %v475_v59, %v442_v58  ;;  %v476_v11 = vmul.f32 0.114, %v2148_v6  ;;  %v606_v13 = vmul.f32 0.114, %v2180_v9  ;;  %v2133_v15 = vld [vmem:[%s2686_s18 + $0x98] sm:$0xff]  ;;  %v380_v30 = vld [vmem:[%s2686_s18 + $0x20] sm:$0xff] }
  0x54   : > { %710 = vmatpush.msra.mxu1 %v334_v19  ;;  %840 = vmatpush.msra.mxu3 %v334_v19  ;;  %v621_v5 = vadd.f32 %v605_v61, %v572_v60  ;;  %v573_v12 = vadd.f32 %v557_v8, %v524_v7  ;;  %v509_v16 = vld [vmem:[%s2692_s27 + $0x18] sm:$0xff]  ;;  %v395_v19 = vmul.f32 0.299, %v379_v14  ;;  %v510_v32 = vld [vmem:[%s2692_s27 + $0x20] sm:$0xff]  ;;  %v396_v35 = vmul.f32 0.299, %v380_v30 }
  0x55   : > { %646 = vmatpush.msra.mxu0 %v317_v20  ;;  %776 = vmatpush.msra.mxu2 %v317_v20  ;;  %v2165_v17 = vld [vmem:[%s2692_s27 + $0x98] sm:$0xff]  ;;  %v492_v18 = vadd.f32 %v476_v11, %v443_v10  ;;  %v428_v20 = vmul.f32 0.587, %v2133_v15  ;;  %v525_v23 = vmul.f32 0.299, %v509_v16  ;;  %v2166_v33 = vld [vmem:[%s2692_s27 + $0xa0] sm:$0xff] }
  0x56   : > { %711 = vmatpush.msra.mxu1 %v333_v21  ;;  %841 = vmatpush.msra.mxu3 %v333_v21  ;;  %v622_v21 = vadd.f32 %v606_v13, %v573_v12  ;;  %v2149_v22 = vld [vmem:[%s2686_s18 + $0x118] sm:$0xff]  ;;  %v558_v24 = vmul.f32 0.587, %v2165_v17  ;;  %v526_v39 = vmul.f32 0.299, %v510_v32  ;;  %v381_v46 = vld [vmem:[%s2686_s18 + $0x28] sm:$0xff] }
  0x57   : > { %647 = vmatpush.msra.mxu0 %v316_v26  ;;  %777 = vmatpush.msra.mxu2 %v316_v26  ;;  %v2181_v25 = vld [vmem:[%s2692_s27 + $0x118] sm:$0xff]  ;;  %v444_v26 = vadd.f32 %v428_v20, %v395_v19  ;;  %v559_v40 = vmul.f32 0.587, %v2166_v33  ;;  %v2135_v47 = vld [vmem:[%s2686_s18 + $0xa8] sm:$0xff]  ;;  %v397_v51 = vmul.f32 0.299, %v381_v46 }
  0x58   : > { %712 = vmatpush.msra.mxu1 %v332_v27  ;;  %842 = vmatpush.msra.mxu3 %v332_v27  ;;  %v477_v27 = vmul.f32 0.114, %v2149_v22  ;;  %v607_v29 = vmul.f32 0.114, %v2181_v25  ;;  %v430_v52 = vmul.f32 0.587, %v2135_v47 }
  0x59   : > { %648 = vmatpush.msra.mxu0 %v315_v28  ;;  %778 = vmatpush.msra.mxu2 %v315_v28  ;;  %v574_v28 = vadd.f32 %v558_v24, %v525_v23  ;;  %v575_v44 = vadd.f32 %v559_v40, %v526_v39  ;;  %v2151_v54 = vld [vmem:[%s2686_s18 + $0x128] sm:$0xff]  ;;  %v382_v62 = vld [vmem:[%s2686_s18 + $0x30] sm:$0xff]  ;;  %v383_v14 = vld [vmem:[%s2686_s18 + $0x38] sm:$0xff] }
  0x5a   : > { %713 = vmatpush.msra.mxu1 %v331_v31  ;;  %843 = vmatpush.msra.mxu3 %v331_v31  ;;  %v2134_v31 = vld [vmem:[%s2686_s18 + $0xa0] sm:$0xff]  ;;  %v493_v34 = vadd.f32 %v477_v27, %v444_v26  ;;  %v2183_v57 = vld [vmem:[%s2692_s27 + $0x128] sm:$0xff]  ;;  %v446_v58 = vadd.f32 %v430_v52, %v397_v51  ;;  %v479_v59 = vmul.f32 0.114, %v2151_v54  ;;  %v2136_v63 = vld [vmem:[%s2686_s18 + $0xb0] sm:$0xff] }
  0x5b   : > { %649 = vmatpush.msra.mxu0 %v314_v36  ;;  %779 = vmatpush.msra.mxu2 %v314_v36  ;;  %v429_v36 = vmul.f32 0.587, %v2134_v31  ;;  %v609_v61 = vmul.f32 0.114, %v2183_v57  ;;  %v512_v0 = vld [vmem:[%s2692_s27 + $0x30] sm:$0xff]  ;;  %v2137_v15 = vld [vmem:[%s2686_s18 + $0xb8] sm:$0xff] }
  0x5c   : > { %714 = vmatpush.msra.mxu1 %v330_v37  ;;  %844 = vmatpush.msra.mxu3 %v330_v37  ;;  %v623_v37 = vadd.f32 %v607_v29, %v574_v28  ;;  %v2168_v1 = vld [vmem:[%s2692_s27 + $0xb0] sm:$0xff]  ;;  %v398_v3 = vmul.f32 0.299, %v382_v62  ;;  %v431_v4 = vmul.f32 0.587, %v2136_v63  ;;  %v513_v16 = vld [vmem:[%s2692_s27 + $0x38] sm:$0xff] }
  0x5d   : > { %650 = vmatpush.msra.mxu0 %v313_v38  ;;  %780 = vmatpush.msra.mxu2 %v313_v38  ;;  %v2150_v38 = vld [vmem:[%s2686_s18 + $0x120] sm:$0xff]  ;;  %v445_v42 = vadd.f32 %v429_v36, %v396_v35  ;;  %v2152_v6 = vld [vmem:[%s2686_s18 + $0x130] sm:$0xff]  ;;  %v528_v7 = vmul.f32 0.299, %v512_v0  ;;  %v561_v8 = vmul.f32 0.587, %v2168_v1 }
  0x5e   : > { %715 = vmatpush.msra.mxu1 %v329_v41  ;;  %845 = vmatpush.msra.mxu3 %v329_v41  ;;  %v2182_v41 = vld [vmem:[%s2692_s27 + $0x120] sm:$0xff]  ;;  %v478_v43 = vmul.f32 0.114, %v2150_v38  ;;  %v2184_v9 = vld [vmem:[%s2692_s27 + $0x130] sm:$0xff]  ;;  %v447_v10 = vadd.f32 %v431_v4, %v398_v3  ;;  %v480_v11 = vmul.f32 0.114, %v2152_v6 }
  0x5f   : > { %651 = vmatpush.msra.mxu0 %v312_v48  ;;  %781 = vmatpush.msra.mxu2 %v312_v48  ;;  %v608_v45 = vmul.f32 0.114, %v2182_v41  ;;  %v511_v48 = vld [vmem:[%s2692_s27 + $0x28] sm:$0xff]  ;;  %v577_v12 = vadd.f32 %v561_v8, %v528_v7  ;;  %v610_v13 = vmul.f32 0.114, %v2184_v9  ;;  %v2169_v17 = vld [vmem:[%s2692_s27 + $0xb8] sm:$0xff] }
  0x60   : > { %716 = vmatpush.msra.mxu1 %v328_v49  ;;  %846 = vmatpush.msra.mxu3 %v328_v49  ;;  %v2167_v49 = vld [vmem:[%s2692_s27 + $0xa8] sm:$0xff]  ;;  %v527_v55 = vmul.f32 0.299, %v511_v48  ;;  %v399_v19 = vmul.f32 0.299, %v383_v14  ;;  %v2153_v22 = vld [vmem:[%s2686_s18 + $0x138] sm:$0xff] }
  0x61   : > { %652 = vmatmul.f32.vlgmr.msra.gmra.mxu0 %v490_v50  ;;  %717 = vmatmul.f32.vlgmr.msra.gmra.mxu1 %v490_v50  ;;  %v494_v50 = vadd.f32 %v478_v43, %v445_v42  ;;  %v560_v56 = vmul.f32 0.587, %v2167_v49  ;;  %v432_v20 = vmul.f32 0.587, %v2137_v15  ;;  %v529_v23 = vmul.f32 0.299, %v513_v16 }
  0x62   : > { %782 = vmatmul.f32.vlgmr.msra.gmra.mxu2 %v620_v53  ;;  %847 = vmatmul.f32.vlgmr.msra.gmra.mxu3 %v620_v53  ;;  %v624_v53 = vadd.f32 %v608_v45, %v575_v44  ;;  %v562_v24 = vmul.f32 0.587, %v2169_v17  ;;  %v2185_v25 = vld [vmem:[%s2692_s27 + $0x138] sm:$0xff]  ;;  %v481_v27 = vmul.f32 0.114, %v2153_v22  ;;  %v384_v30 = vld [vmem:[%s2686_s18 + $0x40] sm:$0xff] }
  0x63   : > { %v576_v60 = vadd.f32 %v560_v56, %v527_v55  ;;  %v448_v26 = vadd.f32 %v432_v20, %v399_v19  ;;  %v611_v29 = vmul.f32 0.114, %v2185_v25  ;;  %v2138_v31 = vld [vmem:[%s2686_s18 + $0xc0] sm:$0xff]  ;;  %v400_v35 = vmul.f32 0.299, %v384_v30  ;;  %v385_v46 = vld [vmem:[%s2686_s18 + $0x48] sm:$0xff] }
  0x64   : > { %v578_v28 = vadd.f32 %v562_v24, %v529_v23  ;;  %v514_v32 = vld [vmem:[%s2692_s27 + $0x40] sm:$0xff]  ;;  %v433_v36 = vmul.f32 0.587, %v2138_v31  ;;  %v2139_v47 = vld [vmem:[%s2686_s18 + $0xc8] sm:$0xff]  ;;  %v401_v51 = vmul.f32 0.299, %v385_v46 }
  0x65   : > { %v2170_v33 = vld [vmem:[%s2692_s27 + $0xc0] sm:$0xff]  ;;  %v530_v39 = vmul.f32 0.299, %v514_v32  ;;  %v515_v48 = vld [vmem:[%s2692_s27 + $0x48] sm:$0xff]  ;;  %v434_v52 = vmul.f32 0.587, %v2139_v47 }
  0x66   : > { %v2154_v38 = vld [vmem:[%s2686_s18 + $0x140] sm:$0xff]  ;;  %v563_v40 = vmul.f32 0.587, %v2170_v33  ;;  %v449_v42 = vadd.f32 %v433_v36, %v400_v35  ;;  %v2171_v49 = vld [vmem:[%s2692_s27 + $0xc8] sm:$0xff]  ;;  %v531_v55 = vmul.f32 0.299, %v515_v48 }
  0x67   : > { %v2186_v41 = vld [vmem:[%s2692_s27 + $0x140] sm:$0xff]  ;;  %v482_v43 = vmul.f32 0.114, %v2154_v38  ;;  %v2155_v54 = vld [vmem:[%s2686_s18 + $0x148] sm:$0xff]  ;;  %v564_v56 = vmul.f32 0.587, %v2171_v49 }
  0x68   : > { %v579_v44 = vadd.f32 %v563_v40, %v530_v39  ;;  %v612_v45 = vmul.f32 0.114, %v2186_v41  ;;  %v2187_v57 = vld [vmem:[%s2692_s27 + $0x148] sm:$0xff]  ;;  %v386_v62 = vld [vmem:[%s2686_s18 + $0x50] sm:$0xff]  ;;  %v387_v14 = vld [vmem:[%s2686_s18 + $0x58] sm:$0xff] }
  0x69   : > { %655 = vmatmul.f32.gmra.mxu0 %v491_v2  ;;  %720 = vmatmul.f32.gmra.mxu1 %v491_v2  ;;  %v495_v2 = vadd.f32 %v479_v59, %v446_v58  ;;  %v450_v58 = vadd.f32 %v434_v52, %v401_v51  ;;  %v483_v59 = vmul.f32 0.114, %v2155_v54  ;;  %v2140_v63 = vld [vmem:[%s2686_s18 + $0xd0] sm:$0xff]  ;;  %v402_v3 = vmul.f32 0.299, %v386_v62  ;;  %v2141_v15 = vld [vmem:[%s2686_s18 + $0xd8] sm:$0xff] }
  0x6a   : > { %785 = vmatmul.f32.gmra.mxu2 %v621_v5  ;;  %850 = vmatmul.f32.gmra.mxu3 %v621_v5  ;;  %v625_v5 = vadd.f32 %v609_v61, %v576_v60  ;;  %v580_v60 = vadd.f32 %v564_v56, %v531_v55  ;;  %v613_v61 = vmul.f32 0.114, %v2187_v57  ;;  %v516_v0 = vld [vmem:[%s2692_s27 + $0x50] sm:$0xff]  ;;  %v435_v4 = vmul.f32 0.587, %v2140_v63  ;;  %v517_v16 = vld [vmem:[%s2692_s27 + $0x58] sm:$0xff] }
  0x6b   : > { %v2172_v1 = vld [vmem:[%s2692_s27 + $0xd0] sm:$0xff]  ;;  %v532_v7 = vmul.f32 0.299, %v516_v0  ;;  %v2173_v17 = vld [vmem:[%s2692_s27 + $0xd8] sm:$0xff]  ;;  %v403_v19 = vmul.f32 0.299, %v387_v14 }
  0x6c   : > { %v2156_v6 = vld [vmem:[%s2686_s18 + $0x150] sm:$0xff]  ;;  %v565_v8 = vmul.f32 0.587, %v2172_v1  ;;  %v436_v20 = vmul.f32 0.587, %v2141_v15  ;;  %v2157_v22 = vld [vmem:[%s2686_s18 + $0x158] sm:$0xff] }
  0x6d   : > { %v2188_v9 = vld [vmem:[%s2692_s27 + $0x150] sm:$0xff]  ;;  %v533_v23 = vmul.f32 0.299, %v517_v16  ;;  %v566_v24 = vmul.f32 0.587, %v2173_v17  ;;  %v2189_v25 = vld [vmem:[%s2692_s27 + $0x158] sm:$0xff] }
  0x6e   : > { %v388_v30 = vld [vmem:[%s2686_s18 + $0x60] sm:$0xff]  ;;  %v389_v46 = vld [vmem:[%s2686_s18 + $0x68] sm:$0xff]  ;;  %v390_v62 = vld [vmem:[%s2686_s18 + $0x70] sm:$0xff] }
  0x6f   : > { %v2142_v31 = vld [vmem:[%s2686_s18 + $0xe0] sm:$0xff]  ;;  %v404_v35 = vmul.f32 0.299, %v388_v30  ;;  %v2143_v47 = vld [vmem:[%s2686_s18 + $0xe8] sm:$0xff]  ;;  %v405_v51 = vmul.f32 0.299, %v389_v46 }
  0x70   : > { %v518_v32 = vld [vmem:[%s2692_s27 + $0x60] sm:$0xff]  ;;  %v437_v36 = vmul.f32 0.587, %v2142_v31  ;;  %v519_v48 = vld [vmem:[%s2692_s27 + $0x68] sm:$0xff]  ;;  %v438_v52 = vmul.f32 0.587, %v2143_v47 }
  0x71   : > { %658 = vmatmul.f32.gmra.mxu0 %v492_v18  ;;  %723 = vmatmul.f32.gmra.mxu1 %v492_v18  ;;  %v496_v18 = vadd.f32 %v480_v11, %v447_v10  ;;  %v451_v10 = vadd.f32 %v435_v4, %v402_v3  ;;  %v484_v11 = vmul.f32 0.114, %v2156_v6  ;;  %v2174_v33 = vld [vmem:[%s2692_s27 + $0xe0] sm:$0xff]  ;;  %v534_v39 = vmul.f32 0.299, %v518_v32  ;;  %v2175_v49 = vld [vmem:[%s2692_s27 + $0xe8] sm:$0xff] }
  0x72   : > { %788 = vmatmul.f32.gmra.mxu2 %v622_v21  ;;  %853 = vmatmul.f32.gmra.mxu3 %v622_v21  ;;  %v626_v21 = vadd.f32 %v610_v13, %v577_v12  ;;  %v581_v12 = vadd.f32 %v565_v8, %v532_v7  ;;  %v614_v13 = vmul.f32 0.114, %v2188_v9  ;;  %v2158_v38 = vld [vmem:[%s2686_s18 + $0x160] sm:$0xff]  ;;  %v567_v40 = vmul.f32 0.587, %v2174_v33  ;;  %v2159_v54 = vld [vmem:[%s2686_s18 + $0x168] sm:$0xff] }
  0x73   : > { %v2190_v41 = vld [vmem:[%s2692_s27 + $0x160] sm:$0xff]  ;;  %v535_v55 = vmul.f32 0.299, %v519_v48  ;;  %v568_v56 = vmul.f32 0.587, %v2175_v49  ;;  %v2191_v57 = vld [vmem:[%s2692_s27 + $0x168] sm:$0xff] }
  0x74   : > { %v2144_v63 = vld [vmem:[%s2686_s18 + $0xf0] sm:$0xff]  ;;  %v406_v3 = vmul.f32 0.299, %v390_v62  ;;  %v391_v14 = vld [vmem:[%s2686_s18 + $0x78] sm:$0xff] }
  0x75   : > { %v520_v0 = vld [vmem:[%s2692_s27 + $0x70] sm:$0xff]  ;;  %v439_v4 = vmul.f32 0.587, %v2144_v63  ;;  %v2145_v15 = vld [vmem:[%s2686_s18 + $0xf8] sm:$0xff] }
  0x76   : > { %v2176_v1 = vld [vmem:[%s2692_s27 + $0xf0] sm:$0xff]  ;;  %v536_v7 = vmul.f32 0.299, %v520_v0  ;;  %v521_v16 = vld [vmem:[%s2692_s27 + $0x78] sm:$0xff] }
  0x77   : > { %v2160_v6 = vld [vmem:[%s2686_s18 + $0x170] sm:$0xff]  ;;  %v569_v8 = vmul.f32 0.587, %v2176_v1  ;;  %v2177_v17 = vld [vmem:[%s2692_s27 + $0xf8] sm:$0xff] }
  0x78   : > { %v2192_v9 = vld [vmem:[%s2692_s27 + $0x170] sm:$0xff] }
  0x79   : > { %661 = vmatmul.f32.gmra.mxu0 %v493_v34  ;;  %726 = vmatmul.f32.gmra.mxu1 %v493_v34  ;;  %v497_v34 = vadd.f32 %v481_v27, %v448_v26  ;;  %v452_v26 = vadd.f32 %v436_v20, %v403_v19  ;;  %v485_v27 = vmul.f32 0.114, %v2157_v22  ;;  %v407_v19 = vmul.f32 0.299, %v391_v14  ;;  %v2161_v22 = vld [vmem:[%s2686_s18 + $0x178] sm:$0xff] }
  0x7a   : > { %791 = vmatmul.f32.gmra.mxu2 %v623_v37  ;;  %856 = vmatmul.f32.gmra.mxu3 %v623_v37  ;;  %v627_v37 = vadd.f32 %v611_v29, %v578_v28  ;;  %v582_v28 = vadd.f32 %v566_v24, %v533_v23  ;;  %v615_v29 = vmul.f32 0.114, %v2189_v25  ;;  %v440_v20 = vmul.f32 0.587, %v2145_v15  ;;  %v2193_v25 = vld [vmem:[%s2692_s27 + $0x178] sm:$0xff] }
  0x7b   : > { %v537_v23 = vmul.f32 0.299, %v521_v16  ;;  %v570_v24 = vmul.f32 0.587, %v2177_v17 }
  0x81   : > { %664 = vmatmul.f32.gmra.mxu0 %v494_v50  ;;  %729 = vmatmul.f32.gmra.mxu1 %v494_v50  ;;  %v498_v50 = vadd.f32 %v482_v43, %v449_v42  ;;  %v453_v42 = vadd.f32 %v437_v36, %v404_v35  ;;  %v486_v43 = vmul.f32 0.114, %v2158_v38 }
  0x82   : > { %794 = vmatmul.f32.gmra.mxu2 %v624_v53  ;;  %859 = vmatmul.f32.gmra.mxu3 %v624_v53  ;;  %v628_v53 = vadd.f32 %v612_v45, %v579_v44  ;;  %v583_v44 = vadd.f32 %v567_v40, %v534_v39  ;;  %v616_v45 = vmul.f32 0.114, %v2190_v41 }
  0x89   : > { %667 = vmatmul.f32.gmra.mxu0 %v495_v2  ;;  %732 = vmatmul.f32.gmra.mxu1 %v495_v2  ;;  %v499_v2 = vadd.f32 %v483_v59, %v450_v58  ;;  %v454_v58 = vadd.f32 %v438_v52, %v405_v51  ;;  %v487_v59 = vmul.f32 0.114, %v2159_v54 }
  0x8a   : > { %797 = vmatmul.f32.gmra.mxu2 %v625_v5  ;;  %862 = vmatmul.f32.gmra.mxu3 %v625_v5  ;;  %v629_v5 = vadd.f32 %v613_v61, %v580_v60  ;;  %v584_v60 = vadd.f32 %v568_v56, %v535_v55  ;;  %v617_v61 = vmul.f32 0.114, %v2191_v57 }
  0x91   : > { %670 = vmatmul.f32.gmra.mxu0 %v496_v18  ;;  %735 = vmatmul.f32.gmra.mxu1 %v496_v18  ;;  %v500_v18 = vadd.f32 %v484_v11, %v451_v10  ;;  %v455_v10 = vadd.f32 %v439_v4, %v406_v3  ;;  %v488_v11 = vmul.f32 0.114, %v2160_v6 }
  0x92   : > { %800 = vmatmul.f32.gmra.mxu2 %v626_v21  ;;  %865 = vmatmul.f32.gmra.mxu3 %v626_v21  ;;  %v630_v21 = vadd.f32 %v614_v13, %v581_v12  ;;  %v585_v12 = vadd.f32 %v569_v8, %v536_v7  ;;  %v618_v13 = vmul.f32 0.114, %v2192_v9 }
  0x99   : > { %673 = vmatmul.f32.gmra.mxu0 %v497_v34  ;;  %738 = vmatmul.f32.gmra.mxu1 %v497_v34  ;;  %v501_v34 = vadd.f32 %v485_v27, %v452_v26  ;;  %v456_v26 = vadd.f32 %v440_v20, %v407_v19  ;;  %v489_v27 = vmul.f32 0.114, %v2161_v22 }
  0x9a   : > { %803 = vmatmul.f32.gmra.mxu2 %v627_v37  ;;  %868 = vmatmul.f32.gmra.mxu3 %v627_v37  ;;  %v631_v37 = vadd.f32 %v615_v29, %v582_v28  ;;  %v586_v28 = vadd.f32 %v570_v24, %v537_v23  ;;  %v619_v29 = vmul.f32 0.114, %v2193_v25 }
  0x9b   : > { %v505_v30 = vadd.f32 %v489_v27, %v456_v26 }
  0x9c   : > { %v635_v31 = vadd.f32 %v619_v29, %v586_v28 }
  0xa1   : > { %676 = vmatmul.f32.gmra.mxu0 %v498_v50  ;;  %741 = vmatmul.f32.gmra.mxu1 %v498_v50  ;;  %v502_v50 = vadd.f32 %v486_v43, %v453_v42 }
  0xa2   : > { %806 = vmatmul.f32.gmra.mxu2 %v628_v53  ;;  %871 = vmatmul.f32.gmra.mxu3 %v628_v53  ;;  %v632_v53 = vadd.f32 %v616_v45, %v583_v44 }
  0xa9   : > { %679 = vmatmul.f32.gmra.mxu0 %v499_v2  ;;  %744 = vmatmul.f32.gmra.mxu1 %v499_v2  ;;  %v503_v2 = vadd.f32 %v487_v59, %v454_v58 }
  0xaa   : > { %809 = vmatmul.f32.gmra.mxu2 %v629_v5  ;;  %874 = vmatmul.f32.gmra.mxu3 %v629_v5  ;;  %v633_v5 = vadd.f32 %v617_v61, %v584_v60 }
  0xb1   : > { %682 = vmatmul.f32.gmra.mxu0 %v500_v18  ;;  %747 = vmatmul.f32.gmra.mxu1 %v500_v18  ;;  %v504_v18 = vadd.f32 %v488_v11, %v455_v10 }
  0xb2   : > { %812 = vmatmul.f32.gmra.mxu2 %v630_v21  ;;  %877 = vmatmul.f32.gmra.mxu3 %v630_v21  ;;  %v634_v21 = vadd.f32 %v618_v13, %v585_v12 }
  0xb9   : > { %685 = vmatmul.f32.gmra.mxu0 %v501_v34  ;;  %750 = vmatmul.f32.gmra.mxu1 %v501_v34 }
  0xba   : > { %815 = vmatmul.f32.gmra.mxu2 %v631_v37  ;;  %880 = vmatmul.f32.gmra.mxu3 %v631_v37 }
  0xc1   : > { %688 = vmatmul.f32.gmra.mxu0 %v502_v50  ;;  %753 = vmatmul.f32.gmra.mxu1 %v502_v50 }
  0xc2   : > { %818 = vmatmul.f32.gmra.mxu2 %v632_v53  ;;  %883 = vmatmul.f32.gmra.mxu3 %v632_v53 }
  0xc9   : > { %691 = vmatmul.f32.gmra.mxu0 %v503_v2  ;;  %756 = vmatmul.f32.gmra.mxu1 %v503_v2 }
  0xca   : > { %821 = vmatmul.f32.gmra.mxu2 %v633_v5  ;;  %886 = vmatmul.f32.gmra.mxu3 %v633_v5 }
  0xd1   : > { %694 = vmatmul.f32.gmra.mxu0 %v504_v18  ;;  %759 = vmatmul.f32.gmra.mxu1 %v504_v18 }
  0xd2   : > { %824 = vmatmul.f32.gmra.mxu2 %v634_v21  ;;  %889 = vmatmul.f32.gmra.mxu3 %v634_v21 }
  0xd9   : > { %697 = vmatmul.f32.gmra.mxu0 %v505_v30  ;;  %762 = vmatmul.f32.gmra.mxu1 %v505_v30 }
  0xda   : > { %827 = vmatmul.f32.gmra.mxu2 %v635_v31  ;;  %892 = vmatmul.f32.gmra.mxu3 %v635_v31 }
  0xde   : > { %v2890_v32 = vpop.f32.mrf.mxu0  ;;  %v2892_v33 = vpop.f32.mrf.mxu1 }
  0xe5   : > { %v2894_v34 = vpop.f32.mrf.mxu2  ;;  %v2896_v35 = vpop.f32.mrf.mxu3 }
  0xe6   : > { %v2898_v36 = vpop.f32.mrf.mxu0  ;;  %v2900_v37 = vpop.f32.mrf.mxu1 }
  0xed   : > { %v2902_v38 = vpop.f32.mrf.mxu2  ;;  %v2904_v39 = vpop.f32.mrf.mxu3 }
  0xee   : > { %v2906_v40 = vpop.f32.mrf.mxu0  ;;  %v2908_v41 = vpop.f32.mrf.mxu1 }
  0xf5   : > { %v2910_v42 = vpop.f32.mrf.mxu2  ;;  %v2912_v43 = vpop.f32.mrf.mxu3 }
  0xf6   : > { %v2914_v44 = vpop.f32.mrf.mxu0  ;;  %v2916_v45 = vpop.f32.mrf.mxu1 }
  0xfd   : > { %v2918_v46 = vpop.f32.mrf.mxu2  ;;  %v2920_v47 = vpop.f32.mrf.mxu3 }
  0xfe   : > { %v2922_v48 = vpop.f32.mrf.mxu0  ;;  %v2924_v49 = vpop.f32.mrf.mxu1 }
 0x105   : > { %v2926_v50 = vpop.f32.mrf.mxu2  ;;  %v2928_v51 = vpop.f32.mrf.mxu3 }
 0x106   : > { %v2930_v52 = vpop.f32.mrf.mxu0  ;;  %v2932_v53 = vpop.f32.mrf.mxu1 }
 0x10d   : > { %v2934_v54 = vpop.f32.mrf.mxu2  ;;  %v2936_v55 = vpop.f32.mrf.mxu3 }
 0x10e   : > { %v2938_v56 = vpop.f32.mrf.mxu0  ;;  %v2940_v57 = vpop.f32.mrf.mxu1 }
 0x115   : > { %v2942_v58 = vpop.f32.mrf.mxu2  ;;  %v2944_v59 = vpop.f32.mrf.mxu3 }
 0x116   : > { %v674_v60 = vpop.f32.mrf.mxu0  ;;  %v739_v61 = vpop.f32.mrf.mxu1 }
 0x11d   : > { %v2946_v62 = vpop.f32.mrf.mxu2  ;;  %v2948_v63 = vpop.f32.mrf.mxu3 }
 0x11e   : > { %v677_v0 = vpop.f32.mrf.mxu0  ;;  %v742_v1 = vpop.f32.mrf.mxu1 }
 0x125   : > { %v2950_v2 = vpop.f32.mrf.mxu2  ;;  %v2952_v3 = vpop.f32.mrf.mxu3 }
 0x126   : > { %v680_v4 = vpop.f32.mrf.mxu0  ;;  %v745_v5 = vpop.f32.mrf.mxu1 }
 0x12d   : > { %v810_v6 = vpop.f32.mrf.mxu2  ;;  %v875_v7 = vpop.f32.mrf.mxu3 }
 0x12e   : > { %v683_v8 = vpop.f32.mrf.mxu0  ;;  %v748_v9 = vpop.f32.mrf.mxu1 }
 0x135   : > { %v813_v10 = vpop.f32.mrf.mxu2  ;;  %v878_v11 = vpop.f32.mrf.mxu3 }
 0x136   : > { %v686_v12 = vpop.f32.mrf.mxu0  ;;  %v751_v13 = vpop.f32.mrf.mxu1 }
 0x13d   : > { %v816_v14 = vpop.f32.mrf.mxu2  ;;  %v881_v15 = vpop.f32.mrf.mxu3 }
 0x13e   : > { %v689_v16 = vpop.f32.mrf.mxu0  ;;  %v754_v17 = vpop.f32.mrf.mxu1 }
 0x145   : > { %v819_v18 = vpop.f32.mrf.mxu2  ;;  %v884_v19 = vpop.f32.mrf.mxu3 }
 0x146   : > { %v692_v20 = vpop.f32.mrf.mxu0  ;;  %v757_v21 = vpop.f32.mrf.mxu1 }
 0x14d   : > { %v822_v22 = vpop.f32.mrf.mxu2  ;;  %v887_v23 = vpop.f32.mrf.mxu3 }
 0x14e   : > { %v695_v24 = vpop.f32.mrf.mxu0  ;;  %v760_v25 = vpop.f32.mrf.mxu1 }
 0x155   : > { %v825_v26 = vpop.f32.mrf.mxu2  ;;  %v890_v27 = vpop.f32.mrf.mxu3 }
 0x156   : > { %v698_v28 = vpop.f32.mrf.mxu0  ;;  %v763_v29 = vpop.f32.mrf.mxu1 }
 0x157   : > { %896 = vmatpush.msrb.mxu0 %v698_v28  ;;  %1450 = vmatpush.msrb.mxu2 %v763_v29 }
 0x159   : > { %897 = vmatpush.msrb.mxu0 %v695_v24  ;;  %1451 = vmatpush.msrb.mxu2 %v760_v25 }
 0x15b   : > { %898 = vmatpush.msrb.mxu0 %v692_v20  ;;  %1452 = vmatpush.msrb.mxu2 %v757_v21 }
 0x15d   : > { %v828_v30 = vpop.f32.mrf.mxu2  ;;  %v893_v31 = vpop.f32.mrf.mxu3  ;;  %899 = vmatpush.msrb.mxu0 %v689_v16  ;;  %1453 = vmatpush.msrb.mxu2 %v754_v17 }
 0x15e   : > { %961 = vmatpush.msrb.mxu1 %v828_v30  ;;  %1515 = vmatpush.msrb.mxu3 %v893_v31 }
 0x15f   : > { %900 = vmatpush.msrb.mxu0 %v686_v12  ;;  %1454 = vmatpush.msrb.mxu2 %v751_v13 }
 0x160   : > { %962 = vmatpush.msrb.mxu1 %v825_v26  ;;  %1516 = vmatpush.msrb.mxu3 %v890_v27 }
 0x161   : > { %901 = vmatpush.msrb.mxu0 %v683_v8  ;;  %1455 = vmatpush.msrb.mxu2 %v748_v9 }
 0x162   : > { %963 = vmatpush.msrb.mxu1 %v822_v22  ;;  %1517 = vmatpush.msrb.mxu3 %v887_v23 }
 0x163   : > { %902 = vmatpush.msrb.mxu0 %v680_v4  ;;  %1456 = vmatpush.msrb.mxu2 %v745_v5 }
 0x164   : > { %964 = vmatpush.msrb.mxu1 %v819_v18  ;;  %1518 = vmatpush.msrb.mxu3 %v884_v19 }
 0x165   : > { %903 = vmatpush.msrb.mxu0 %v677_v0  ;;  %1457 = vmatpush.msrb.mxu2 %v742_v1  ;;  %v375_v0 = vld [vmem:[%s4042_s5 + $0x78] sm:$0xff] }
 0x166   : > { %965 = vmatpush.msrb.mxu1 %v816_v14  ;;  %1519 = vmatpush.msrb.mxu3 %v881_v15 }
 0x167   : > { %904 = vmatpush.msrb.mxu0 %v674_v60  ;;  %1458 = vmatpush.msrb.mxu2 %v739_v61  ;;  %v374_v60 = vld [vmem:[%s4042_s5 + $0x70] sm:$0xff] }
 0x168   : > { %966 = vmatpush.msrb.mxu1 %v813_v10  ;;  %1520 = vmatpush.msrb.mxu3 %v878_v11  ;;  %v358_v61 = vld [vmem:[%s4041_s4 + $0x70] sm:$0xff] }
 0x169   : > { %905 = vmatpush.msrb.mxu0 %v2938_v56  ;;  %1459 = vmatpush.msrb.mxu2 %v2940_v57  ;;  %v356_v56 = vld [vmem:[%s4041_s4 + $0x60] sm:$0xff] }
 0x16a   : > { %967 = vmatpush.msrb.mxu1 %v810_v6  ;;  %1521 = vmatpush.msrb.mxu3 %v875_v7  ;;  %v372_v57 = vld [vmem:[%s4042_s5 + $0x60] sm:$0xff] }
 0x16b   : > { %906 = vmatpush.msrb.mxu0 %v2930_v52  ;;  %1460 = vmatpush.msrb.mxu2 %v2932_v53  ;;  %v370_v52 = vld [vmem:[%s4042_s5 + $0x50] sm:$0xff] }
 0x16c   : > { %968 = vmatpush.msrb.mxu1 %v2950_v2  ;;  %1522 = vmatpush.msrb.mxu3 %v2952_v3  ;;  %v354_v53 = vld [vmem:[%s4041_s4 + $0x50] sm:$0xff] }
 0x16d   : > { %907 = vmatpush.msrb.mxu0 %v2922_v48  ;;  %1461 = vmatpush.msrb.mxu2 %v2924_v49  ;;  %v368_v48 = vld [vmem:[%s4042_s5 + $0x40] sm:$0xff] }
 0x16e   : > { %969 = vmatpush.msrb.mxu1 %v2946_v62  ;;  %1523 = vmatpush.msrb.mxu3 %v2948_v63  ;;  %v352_v49 = vld [vmem:[%s4041_s4 + $0x40] sm:$0xff]  ;;  %v359_v63 = vld [vmem:[%s4041_s4 + $0x78] sm:$0xff] }
 0x16f   : > { %908 = vmatpush.msrb.mxu0 %v2914_v44  ;;  %1462 = vmatpush.msrb.mxu2 %v2916_v45  ;;  %v344_v44 = vld [vmem:[%s4041_s4] sm:$0xff]  ;;  %v366_v45 = vld [vmem:[%s4042_s5 + $0x30] sm:$0xff] }
 0x170   : > { %970 = vmatpush.msrb.mxu1 %v2942_v58  ;;  %1524 = vmatpush.msrb.mxu3 %v2944_v59  ;;  %v373_v58 = vld [vmem:[%s4042_s5 + $0x68] sm:$0xff] }
 0x171   : > { %909 = vmatpush.msrb.mxu0 %v2906_v40  ;;  %1463 = vmatpush.msrb.mxu2 %v2908_v41  ;;  %v360_v40 = vld [vmem:[%s4042_s5] sm:$0xff]  ;;  %v365_v41 = vld [vmem:[%s4042_s5 + $0x28] sm:$0xff] }
 0x172   : > { %971 = vmatpush.msrb.mxu1 %v2934_v54  ;;  %1525 = vmatpush.msrb.mxu3 %v2936_v55  ;;  %v371_v54 = vld [vmem:[%s4042_s5 + $0x58] sm:$0xff]  ;;  %v357_v59 = vld [vmem:[%s4041_s4 + $0x68] sm:$0xff] }
 0x173   : > { %910 = vmatpush.msrb.mxu0 %v2898_v36  ;;  %1464 = vmatpush.msrb.mxu2 %v2900_v37  ;;  %v346_v36 = vld [vmem:[%s4041_s4 + $0x10] sm:$0xff]  ;;  %v347_v37 = vld [vmem:[%s4041_s4 + $0x18] sm:$0xff] }
 0x174   : > { %972 = vmatpush.msrb.mxu1 %v2926_v50  ;;  %1526 = vmatpush.msrb.mxu3 %v2928_v51  ;;  %v353_v50 = vld [vmem:[%s4041_s4 + $0x48] sm:$0xff]  ;;  %v355_v55 = vld [vmem:[%s4041_s4 + $0x58] sm:$0xff] }
 0x175   : > { %911 = vmatpush.msrb.mxu0 %v2890_v32  ;;  %1465 = vmatpush.msrb.mxu2 %v2892_v33  ;;  %v345_v32 = vld [vmem:[%s4041_s4 + $0x8] sm:$0xff] }
 0x176   : > { %973 = vmatpush.msrb.mxu1 %v2918_v46  ;;  %1527 = vmatpush.msrb.mxu3 %v2920_v47  ;;  %v361_v33 = vld [vmem:[%s4042_s5 + $0x8] sm:$0xff]  ;;  %v367_v46 = vld [vmem:[%s4042_s5 + $0x38] sm:$0xff] }
 0x177   : > { %912 = vmatmul.f32.vlgmr.msrb.gmra.mxu0 %v344_v44  ;;  %1466 = vmatmul.f32.vlgmr.msrb.gmra.mxu2 %v360_v40  ;;  %v351_v47 = vld [vmem:[%s4041_s4 + $0x38] sm:$0xff]  ;;  %v369_v51 = vld [vmem:[%s4042_s5 + $0x48] sm:$0xff] }
 0x178   : > { %974 = vmatpush.msrb.mxu1 %v2910_v42  ;;  %1528 = vmatpush.msrb.mxu3 %v2912_v43  ;;  %v349_v42 = vld [vmem:[%s4041_s4 + $0x28] sm:$0xff]  ;;  %v350_v43 = vld [vmem:[%s4041_s4 + $0x30] sm:$0xff] }
 0x17a   : > { %975 = vmatpush.msrb.mxu1 %v2902_v38  ;;  %1529 = vmatpush.msrb.mxu3 %v2904_v39  ;;  %v364_v38 = vld [vmem:[%s4042_s5 + $0x20] sm:$0xff] }
 0x17b   : > { %v348_v39 = vld [vmem:[%s4041_s4 + $0x20] sm:$0xff] }
 0x17c   : > { %976 = vmatpush.msrb.mxu1 %v2894_v34  ;;  %1530 = vmatpush.msrb.mxu3 %v2896_v35  ;;  %v362_v34 = vld [vmem:[%s4042_s5 + $0x10] sm:$0xff]  ;;  %v363_v35 = vld [vmem:[%s4042_s5 + $0x18] sm:$0xff] }
 0x17d   : > { %1531 = vmatmul.f32.vlgmr.msrb.gmra.mxu3 %v360_v40  ;;  %977 = vmatmul.f32.vlgmr.msrb.gmra.mxu1 %v344_v44 }
 0x17f   : > { %915 = vmatmul.f32.gmra.mxu0 %v345_v32  ;;  %1469 = vmatmul.f32.gmra.mxu2 %v361_v33 }
 0x185   : > { %1534 = vmatmul.f32.gmra.mxu3 %v361_v33  ;;  %980 = vmatmul.f32.gmra.mxu1 %v345_v32 }
 0x187   : > { %918 = vmatmul.f32.gmra.mxu0 %v346_v36  ;;  %1472 = vmatmul.f32.gmra.mxu2 %v362_v34 }
 0x18d   : > { %1537 = vmatmul.f32.gmra.mxu3 %v362_v34  ;;  %983 = vmatmul.f32.gmra.mxu1 %v346_v36 }
 0x18f   : > { %1475 = vmatmul.f32.gmra.mxu2 %v363_v35  ;;  %921 = vmatmul.f32.gmra.mxu0 %v347_v37 }
 0x195   : > { %1540 = vmatmul.f32.gmra.mxu3 %v363_v35  ;;  %986 = vmatmul.f32.gmra.mxu1 %v347_v37 }
 0x197   : > { %1478 = vmatmul.f32.gmra.mxu2 %v364_v38  ;;  %924 = vmatmul.f32.gmra.mxu0 %v348_v39 }
 0x19d   : > { %989 = vmatmul.f32.gmra.mxu1 %v348_v39  ;;  %1543 = vmatmul.f32.gmra.mxu3 %v364_v38 }
 0x19f   : > { %1481 = vmatmul.f32.gmra.mxu2 %v365_v41  ;;  %927 = vmatmul.f32.gmra.mxu0 %v349_v42 }
 0x1a5   : > { %1546 = vmatmul.f32.gmra.mxu3 %v365_v41  ;;  %992 = vmatmul.f32.gmra.mxu1 %v349_v42 }
 0x1a7   : > { %930 = vmatmul.f32.gmra.mxu0 %v350_v43  ;;  %1484 = vmatmul.f32.gmra.mxu2 %v366_v45 }
 0x1ad   : > { %1549 = vmatmul.f32.gmra.mxu3 %v366_v45  ;;  %995 = vmatmul.f32.gmra.mxu1 %v350_v43 }
 0x1af   : > { %1487 = vmatmul.f32.gmra.mxu2 %v367_v46  ;;  %933 = vmatmul.f32.gmra.mxu0 %v351_v47 }
 0x1b5   : > { %998 = vmatmul.f32.gmra.mxu1 %v351_v47  ;;  %1552 = vmatmul.f32.gmra.mxu3 %v367_v46 }
 0x1b7   : > { %1490 = vmatmul.f32.gmra.mxu2 %v368_v48  ;;  %936 = vmatmul.f32.gmra.mxu0 %v352_v49 }
 0x1bd   : > { %1555 = vmatmul.f32.gmra.mxu3 %v368_v48  ;;  %1001 = vmatmul.f32.gmra.mxu1 %v352_v49 }
 0x1bf   : > { %939 = vmatmul.f32.gmra.mxu0 %v353_v50  ;;  %1493 = vmatmul.f32.gmra.mxu2 %v369_v51 }
 0x1c5   : > { %1558 = vmatmul.f32.gmra.mxu3 %v369_v51  ;;  %1004 = vmatmul.f32.gmra.mxu1 %v353_v50 }
 0x1c7   : > { %1496 = vmatmul.f32.gmra.mxu2 %v370_v52  ;;  %942 = vmatmul.f32.gmra.mxu0 %v354_v53 }
 0x1cd   : > { %1007 = vmatmul.f32.gmra.mxu1 %v354_v53  ;;  %1561 = vmatmul.f32.gmra.mxu3 %v370_v52 }
 0x1cf   : > { %1499 = vmatmul.f32.gmra.mxu2 %v371_v54  ;;  %945 = vmatmul.f32.gmra.mxu0 %v355_v55 }
 0x1d5   : > { %1564 = vmatmul.f32.gmra.mxu3 %v371_v54  ;;  %1010 = vmatmul.f32.gmra.mxu1 %v355_v55 }
 0x1d7   : > { %948 = vmatmul.f32.gmra.mxu0 %v356_v56  ;;  %1502 = vmatmul.f32.gmra.mxu2 %v372_v57 }
 0x1dd   : > { %1567 = vmatmul.f32.gmra.mxu3 %v372_v57  ;;  %1013 = vmatmul.f32.gmra.mxu1 %v356_v56 }
 0x1df   : > { %1505 = vmatmul.f32.gmra.mxu2 %v373_v58  ;;  %951 = vmatmul.f32.gmra.mxu0 %v357_v59 }
 0x1e5   : > { %1570 = vmatmul.f32.gmra.mxu3 %v373_v58  ;;  %1016 = vmatmul.f32.gmra.mxu1 %v357_v59 }
 0x1e7   : > { %1508 = vmatmul.f32.gmra.mxu2 %v374_v60  ;;  %954 = vmatmul.f32.gmra.mxu0 %v358_v61 }
 0x1ed   : > { %1573 = vmatmul.f32.gmra.mxu3 %v374_v60  ;;  %1019 = vmatmul.f32.gmra.mxu1 %v358_v61 }
 0x1ef   : > { %957 = vmatmul.f32.gmra.mxu0 %v359_v63  ;;  %1511 = vmatmul.f32.gmra.mxu2 %v375_v0 }
 0x1f4   : > { %v3076_v62 = vpop.f32.mrf.mxu0 }
 0x1f5   : > { %1026 = vmax.xlane.f32.xlu0 %v3076_v62  ;;  %1576 = vmatmul.f32.gmra.mxu3 %v375_v0 }
 0x1f6   : > { %1022 = vmatmul.f32.gmra.mxu1 %v359_v63 }
 0x1fa   : > { %v3085_v1 = vpop.f32.mrf.mxu2  ;;  %v3087_v2 = vpop.f32.mrf.mxu1 }
 0x1fb   : > { %4145 = vst [vmem:[#allocation8_spill] sm:$0xff] %v3085_v1  ;;  %1580 = vmax.xlane.f32.xlu1 %v3085_v1  ;;  %1199 = vmax.xlane.f32.xlu2 %v3087_v2 }
 0x1fc   : > { %v3091_v3 = vpop.f32.mrf.mxu0 }
 0x1fd   : > { %1028 = vmax.xlane.f32.xlu0 %v3091_v3 }
 0x200   : > { %v3094_v4 = vpop.f32.mrf.mxu3 }
 0x201   : > { %4146 = vst [vmem:[#allocation9_spill] sm:$0xff] %v3094_v4 }
 0x202   : > { %v3096_v5 = vpop.f32.mrf.mxu1  ;;  %v3098_v6 = vpop.f32.mrf.mxu2 }
 0x203   : > { %4147 = vst [vmem:[#allocation10_spill] sm:$0xff] %v3096_v5  ;;  %1582 = vmax.xlane.f32.xlu2 %v3098_v6 }
 0x204   : > { %4148 = vst [vmem:[#allocation11_spill] sm:$0xff] %v3098_v6  ;;  %v3101_v7 = vpop.f32.mrf.mxu0 }
 0x205   : > { %1753 = vmax.xlane.f32.xlu0 %v3094_v4  ;;  %1030 = vmax.xlane.f32.xlu1 %v3101_v7 }
 0x208   : > { %v3105_v8 = vpop.f32.mrf.mxu3 }
 0x209   : > { %4149 = vst [vmem:[#allocation12_spill] sm:$0xff] %v3105_v8 }
 0x20a   : > { %v3107_v9 = vpop.f32.mrf.mxu1  ;;  %v3109_v10 = vpop.f32.mrf.mxu2 }
 0x20b   : > { %4150 = vst [vmem:[#allocation13_spill] sm:$0xff] %v3109_v10 }
 0x20c   : > { %v3116_v12 = vpop.f32.mrf.mxu0 }
 0x20d   : > { %1201 = vmax.xlane.f32.xlu0 %v3096_v5  ;;  %1755 = vmax.xlane.f32.xlu1 %v3105_v8 }
 0x210   : > { %v3113_v11 = vpop.f32.mrf.mxu3 }
 0x211   : > { %4151 = vst [vmem:[#allocation14_spill] sm:$0xff] %v3113_v11  ;;  %1757 = vmax.xlane.f32.xlu2 %v3113_v11 }
 0x212   : > { %v3120_v13 = vpop.f32.mrf.mxu1  ;;  %v3122_v14 = vpop.f32.mrf.mxu2 }
 0x213   : > { %4152 = vst [vmem:[#allocation15_spill] sm:$0xff] %v3120_v13 }
 0x214   : > { %4153 = vst [vmem:[#allocation16_spill] sm:$0xff] %v3122_v14  ;;  %v3129_v16 = vpop.f32.mrf.mxu0 }
 0x215   : > { %1584 = vmax.xlane.f32.xlu0 %v3109_v10  ;;  %1203 = vmax.xlane.f32.xlu1 %v3107_v9 }
 0x218   : > { %v3125_v15 = vpop.f32.mrf.mxu3 }
 0x219   : > { %1205 = vmax.xlane.f32.xlu2 %v3120_v13  ;;  %4154 = vst [vmem:[#allocation17_spill] sm:$0xff] %v3125_v15 }
 0x21a   : > { %v3131_v17 = vpop.f32.mrf.mxu2  ;;  %v3134_v18 = vpop.f32.mrf.mxu1 }
 0x21b   : > { %4155 = vst [vmem:[#allocation18_spill] sm:$0xff] %v3131_v17 }
 0x21c   : > { %4156 = vst [vmem:[#allocation19_spill] sm:$0xff] %v3134_v18  ;;  %v3140_v20 = vpop.f32.mrf.mxu0 }
 0x21d   : > { %1759 = vmax.xlane.f32.xlu0 %v3125_v15  ;;  %1032 = vmax.xlane.f32.xlu1 %v3116_v12 }
 0x220   : > { %v3138_v19 = vpop.f32.mrf.mxu3 }
 0x221   : > { %1034 = vmax.xlane.f32.xlu2 %v3129_v16  ;;  %4157 = vst [vmem:[#allocation20_spill] sm:$0xff] %v3138_v19 }
 0x222   : > { %v3143_v21 = vpop.f32.mrf.mxu2  ;;  %v3147_v22 = vpop.f32.mrf.mxu1 }
 0x223   : > { %4158 = vst [vmem:[#allocation21_spill] sm:$0xff] %v3143_v21 }
 0x224   : > { %4159 = vst [vmem:[#allocation22_spill] sm:$0xff] %v3147_v22  ;;  %v3152_v24 = vpop.f32.mrf.mxu0 }
 0x225   : > { %1207 = vmax.xlane.f32.xlu0 %v3134_v18  ;;  %1586 = vmax.xlane.f32.xlu1 %v3122_v14 }
 0x228   : > { %v3149_v23 = vpop.f32.mrf.mxu3 }
 0x229   : > { %1588 = vmax.xlane.f32.xlu2 %v3131_v17  ;;  %4160 = vst [vmem:[#allocation23_spill] sm:$0xff] %v3149_v23 }
 0x22a   : > { %v3156_v25 = vpop.f32.mrf.mxu2  ;;  %v3158_v26 = vpop.f32.mrf.mxu1 }
 0x22b   : > { %4161 = vst [vmem:[#allocation24_spill] sm:$0xff] %v3156_v25 }
 0x22c   : > { %4162 = vst [vmem:[#allocation25_spill] sm:$0xff] %v3158_v26  ;;  %v3165_v28 = vpop.f32.mrf.mxu0 }
 0x22d   : > { %1590 = vmax.xlane.f32.xlu0 %v3143_v21  ;;  %1761 = vmax.xlane.f32.xlu1 %v3138_v19 }
 0x230   : > { %v3161_v27 = vpop.f32.mrf.mxu3 }
 0x231   : > { %1036 = vmax.xlane.f32.xlu2 %v3140_v20  ;;  %4163 = vst [vmem:[#allocation26_spill] sm:$0xff] %v3161_v27 }
 0x232   : > { %v3167_v29 = vpop.f32.mrf.mxu2  ;;  %v3170_v30 = vpop.f32.mrf.mxu1 }
 0x233   : > { %4164 = vst [vmem:[#allocation27_spill] sm:$0xff] %v3167_v29 }
 0x234   : > { %4165 = vst [vmem:[#allocation28_spill] sm:$0xff] %v3170_v30  ;;  %v3176_v44 = vpop.f32.mrf.mxu0 }
 0x235   : > { %1209 = vmax.xlane.f32.xlu1 %v3147_v22  ;;  %1038 = vmax.xlane.f32.xlu0 %v3152_v24 }
 0x238   : > { %v3174_v31 = vpop.f32.mrf.mxu3 }
 0x239   : > { %1763 = vmax.xlane.f32.xlu2 %v3149_v23  ;;  %4166 = vst [vmem:[#allocation29_spill] sm:$0xff] %v3174_v31 }
 0x23a   : > { %v3179_v40 = vpop.f32.mrf.mxu2  ;;  %v3183_v32 = vpop.f32.mrf.mxu1 }
 0x23b   : > { %4167 = vst [vmem:[#allocation30_spill] sm:$0xff] %v3179_v40 }
 0x23c   : > { %4168 = vst [vmem:[#allocation31_spill] sm:$0xff] %v3183_v32  ;;  %v3188_v36 = vpop.f32.mrf.mxu0 }
 0x23d   : > { %1592 = vmax.xlane.f32.xlu1 %v3156_v25  ;;  %1765 = vmax.xlane.f32.xlu0 %v3161_v27 }
 0x240   : > { %v3185_v33 = vpop.f32.mrf.mxu3 }
 0x241   : > { %1211 = vmax.xlane.f32.xlu2 %v3158_v26  ;;  %4169 = vst [vmem:[#allocation32_spill] sm:$0xff] %v3185_v33 }
 0x242   : > { %v3192_v34 = vpop.f32.mrf.mxu2  ;;  %v3194_v35 = vpop.f32.mrf.mxu1 }
 0x243   : > { %4170 = vst [vmem:[#allocation33_spill] sm:$0xff] %v3192_v34 }
 0x244   : > { %4171 = vst [vmem:[#allocation34_spill] sm:$0xff] %v3194_v35  ;;  %v3201_v38 = vpop.f32.mrf.mxu0 }
 0x245   : > { %1213 = vmax.xlane.f32.xlu0 %v3170_v30  ;;  %1040 = vmax.xlane.f32.xlu1 %v3165_v28 }
 0x248   : > { %v3197_v37 = vpop.f32.mrf.mxu3 }
 0x249   : > { %1594 = vmax.xlane.f32.xlu2 %v3167_v29  ;;  %4172 = vst [vmem:[#allocation35_spill] sm:$0xff] %v3197_v37 }
 0x24a   : > { %v3203_v39 = vpop.f32.mrf.mxu2  ;;  %v3206_v41 = vpop.f32.mrf.mxu1 }
 0x24b   : > { %4173 = vst [vmem:[#allocation36_spill] sm:$0xff] %v3203_v39 }
 0x24c   : > { %4174 = vst [vmem:[#allocation37_spill] sm:$0xff] %v3206_v41  ;;  %v3214_v45 = vpop.f32.mrf.mxu0 }
 0x24d   : > { %1596 = vmax.xlane.f32.xlu0 %v3179_v40  ;;  %1767 = vmax.xlane.f32.xlu1 %v3174_v31 }
 0x250   : > { %v3210_v42 = vpop.f32.mrf.mxu3 }
 0x251   : > { %1042 = vmax.xlane.f32.xlu2 %v3176_v44  ;;  %4175 = vst [vmem:[#allocation38_spill] sm:$0xff] %v3210_v42 }
 0x252   : > { %v3217_v46 = vpop.f32.mrf.mxu2  ;;  %v3221_v47 = vpop.f32.mrf.mxu1 }
 0x253   : > { %4176 = vst [vmem:[#allocation39_spill] sm:$0xff] %v3217_v46 }
 0x254   : > { %4177 = vst [vmem:[#allocation40_spill] sm:$0xff] %v3221_v47  ;;  %v3232_v52 = vpop.f32.mrf.mxu0 }
 0x255   : > { %1215 = vmax.xlane.f32.xlu1 %v3183_v32  ;;  %1044 = vmax.xlane.f32.xlu0 %v3188_v36 }
 0x258   : > { %v3225_v49 = vpop.f32.mrf.mxu3 }
 0x259   : > { %1769 = vmax.xlane.f32.xlu2 %v3185_v33  ;;  %4178 = vst [vmem:[#allocation41_spill] sm:$0xff] %v3225_v49 }
 0x25a   : > { %v3236_v53 = vpop.f32.mrf.mxu2  ;;  %v3238_v54 = vpop.f32.mrf.mxu1 }
 0x25b   : > { %4179 = vst [vmem:[#allocation42_spill] sm:$0xff] %v3236_v53 }
 0x25c   : > { %4180 = vst [vmem:[#allocation43_spill] sm:$0xff] %v3238_v54  ;;  %v3251_v59 = vpop.f32.mrf.mxu0 }
 0x25d   : > { %1598 = vmax.xlane.f32.xlu1 %v3192_v34  ;;  %1771 = vmax.xlane.f32.xlu0 %v3197_v37 }
 0x260   : > { %v3245_v57 = vpop.f32.mrf.mxu3 }
 0x261   : > { %1217 = vmax.xlane.f32.xlu2 %v3194_v35  ;;  %4181 = vst [vmem:[#allocation44_spill] sm:$0xff] %v3245_v57 }
 0x262   : > { %v3253_v60 = vpop.f32.mrf.mxu2  ;;  %v3260_v0 = vpop.f32.mrf.mxu1 }
 0x263   : > { %4182 = vst [vmem:[#allocation45_spill] sm:$0xff] %v3253_v60 }
 0x264   : > { %4183 = vst [vmem:[#allocation46_spill] sm:$0xff] %v3260_v0 }
 0x265   : > { %1219 = vmax.xlane.f32.xlu0 %v3206_v41  ;;  %1046 = vmax.xlane.f32.xlu1 %v3201_v38 }
 0x268   : > { %v3212_v43 = vpop.xlane.xlu0 %1026 }
 0x269   : > { %1600 = vmax.xlane.f32.xlu2 %v3203_v39  ;;  %v3268_v39 = vpop.f32.mrf.mxu0 }
 0x26a   : > { %v3275_v15 = vpop.f32.mrf.mxu2 }
 0x26b   : > { %4185 = vst [vmem:[#allocation48_spill] sm:$0xff] %v3275_v15 }
 0x26d   : > { %1602 = vmax.xlane.f32.xlu0 %v3217_v46  ;;  %1773 = vmax.xlane.f32.xlu1 %v3210_v42 }
 0x26e   : > { %v3223_v48 = vpop.xlane.xlu1 %1580  ;;  %v3229_v51 = vpop.xlane.xlu2 %1199 }
 0x270   : > { %v3227_v50 = vpop.xlane.xlu0 %1028 }
 0x271   : > { %1048 = vmax.xlane.f32.xlu2 %v3214_v45  ;;  %v3290_v29 = vpop.f32.mrf.mxu0 }
 0x272   : > { %4188 = vst [vmem:[#allocation51_spill] sm:$0xff] %v3290_v29  ;;  %v3300_v25 = vpop.f32.mrf.mxu2 }
 0x273   : > { %4189 = vst [vmem:[#allocation52_spill] sm:$0xff] %v3300_v25 }
 0x275   : > { %1221 = vmax.xlane.f32.xlu1 %v3221_v47  ;;  %1050 = vmax.xlane.f32.xlu0 %v3232_v52 }
 0x276   : > { %v3247_v58 = vpop.xlane.xlu2 %1582 }
 0x278   : > { %v3240_v55 = vpop.xlane.xlu0 %1753  ;;  %v3242_v56 = vpop.xlane.xlu1 %1030 }
 0x279   : > { %1775 = vmax.xlane.f32.xlu2 %v3225_v49  ;;  %v3288_v49 = vpop.f32.mrf.mxu1 }
 0x27a   : > { %4187 = vst [vmem:[#allocation50_spill] sm:$0xff] %v3288_v49 }
 0x27d   : > { %1604 = vmax.xlane.f32.xlu1 %v3236_v53  ;;  %1777 = vmax.xlane.f32.xlu0 %v3245_v57  ;;  %v3266_v53 = vpop.f32.mrf.mxu3 }
 0x27e   : > { %4184 = vst [vmem:[#allocation47_spill] sm:$0xff] %v3266_v53 }
 0x280   : > { %v3255_v61 = vpop.xlane.xlu0 %1201  ;;  %v3257_v63 = vpop.xlane.xlu1 %1755 }
 0x281   : > { %1223 = vmax.xlane.f32.xlu2 %v3238_v54  ;;  %v3307_v54 = vpop.f32.mrf.mxu1 }
 0x282   : > { %4191 = vst [vmem:[#allocation54_spill] sm:$0xff] %v3307_v54 }
 0x284   : > { %v3262_v46 = vpop.xlane.xlu2 %1757 }
 0x285   : > { %1225 = vmax.xlane.f32.xlu0 %v3260_v0  ;;  %1052 = vmax.xlane.f32.xlu1 %v3251_v59  ;;  %v3281_v0 = vpop.f32.mrf.mxu3 }
 0x286   : > { %4186 = vst [vmem:[#allocation49_spill] sm:$0xff] %v3281_v0 }
 0x288   : > { %v3270_v34 = vpop.xlane.xlu0 %1584  ;;  %v3272_v11 = vpop.xlane.xlu1 %1203 }
 0x289   : > { %1606 = vmax.xlane.f32.xlu2 %v3253_v60 }
 0x28c   : > { %v3277_v57 = vpop.xlane.xlu2 %1205 }
 0x28d   : > { %1608 = vmax.xlane.f32.xlu0 %v3275_v15  ;;  %1779 = vmax.xlane.f32.xlu1 %v3266_v53  ;;  %v3302_v47 = vpop.f32.mrf.mxu3 }
 0x28e   : > { %4190 = vst [vmem:[#allocation53_spill] sm:$0xff] %v3302_v47 }
 0x290   : > { %v3283_v40 = vpop.xlane.xlu0 %1759  ;;  %v3285_v4 = vpop.xlane.xlu1 %1032 }
 0x291   : > { %1054 = vmax.xlane.f32.xlu2 %v3268_v39 }
 0x294   : > { %v3292_v60 = vpop.xlane.xlu2 %1034 }
 0x295   : > { %1227 = vmax.xlane.f32.xlu1 %v3288_v49  ;;  %1056 = vmax.xlane.f32.xlu0 %v3290_v29 }
 0x298   : > { %v1208_v15 = vpop.xlane.xlu0 %1207  ;;  %v1587_v53 = vpop.xlane.xlu1 %1586 }
 0x299   : > { %v1231_v42 = vmax.f32 %v3229_v51, %v1208_v15  ;;  %1781 = vmax.xlane.f32.xlu2 %v3281_v0 }
 0x29c   : > { %v1589_v37 = vpop.xlane.xlu2 %1588 }
 0x29d   : > { %v1612_v21 = vmax.f32 %v3223_v48, %v1589_v37  ;;  %1610 = vmax.xlane.f32.xlu1 %v3300_v25  ;;  %1783 = vmax.xlane.f32.xlu0 %v3302_v47 }
 0x2a0   : > { %v1591_v49 = vpop.xlane.xlu0 %1590  ;;  %v1762_v41 = vpop.xlane.xlu1 %1761 }
 0x2a1   : > { %v1613_v33 = vmax.f32 %v3247_v58, %v1591_v49  ;;  %v1785_v15 = vmax.f32 %v3240_v55, %v1762_v41  ;;  %1229 = vmax.xlane.f32.xlu2 %v3307_v54 }
 0x2a4   : > { %v1037_v51 = vpop.xlane.xlu2 %1036 }
 0x2a5   : > { %v1059_v0 = vmax.f32 %v3227_v50, %v1037_v51 }
 0x2a8   : > { %v1210_v17 = vpop.xlane.xlu1 %1209  ;;  %v3313_v35 = vpop.xlane.xlu0 %1038 }
 0x2a9   : > { %v1232_v37 = vmax.f32 %v3255_v61, %v1210_v17 }
 0x2ac   : > { %v1764_v25 = vpop.xlane.xlu2 %1763 }
 0x2ad   : > { %v1786_v47 = vmax.f32 %v3257_v63, %v1764_v25 }
 0x2b0   : > { %v1593_v31 = vpop.xlane.xlu1 %1592  ;;  %v1766_v49 = vpop.xlane.xlu0 %1765 }
 0x2b1   : > { %v1614_v41 = vmax.f32 %v3270_v34, %v1593_v31  ;;  %v1787_v55 = vmax.f32 %v3262_v46, %v1766_v49 }
 0x2b4   : > { %v1212_v58 = vpop.xlane.xlu2 %1211 }
 0x2b5   : > { %v1233_v50 = vmax.f32 %v3272_v11, %v1212_v58 }
 0x2b8   : > { %v3322_v51 = vpop.xlane.xlu0 %1213  ;;  %v1041_v54 = vpop.xlane.xlu1 %1040 }
 0x2bc   : > { %v1595_v61 = vpop.xlane.xlu2 %1594 }
 0x2bd   : > { %v1615_v48 = vmax.f32 %v1587_v53, %v1595_v61 }
 0x2c0   : > { %v1597_v14 = vpop.xlane.xlu0 %1596  ;;  %v1768_v32 = vpop.xlane.xlu1 %1767 }
 0x2c1   : > { %v1616_v25 = vmax.f32 %v1612_v21, %v1597_v14  ;;  %v1788_v63 = vmax.f32 %v3283_v40, %v1768_v32 }
 0x2c4   : > { %v1043_v27 = vpop.xlane.xlu2 %1042 }
 0x2c8   : > { %v1216_v31 = vpop.xlane.xlu1 %1215  ;;  %v1045_v34 = vpop.xlane.xlu0 %1044 }
 0x2c9   : > { %v1235_v46 = vmax.f32 %v1231_v42, %v1216_v31 }
 0x2cc   : > { %v1770_v49 = vpop.xlane.xlu2 %1769 }
 0x2cd   : > { %v1789_v10 = vmax.f32 %v1785_v15, %v1770_v49 }
 0x2d0   : > { %v1599_v11 = vpop.xlane.xlu1 %1598  ;;  %v1772_v58 = vpop.xlane.xlu0 %1771 }
 0x2d1   : > { %v1617_v30 = vmax.f32 %v1613_v33, %v1599_v11  ;;  %v1790_v23 = vmax.f32 %v1786_v47, %v1772_v58 }
 0x2d4   : > { %v1218_v1 = vpop.xlane.xlu2 %1217 }
 0x2d5   : > { %v1236_v26 = vmax.f32 %v1232_v37, %v1218_v1  ;;  %v4192_v37 = vmax.f32 %v3212_v43, %v3292_v60  ;;  %v4193_v43 = vmax.f32 %v3242_v56, %v3313_v35 }
 0x2d8   : > { %v1220_v17 = vpop.xlane.xlu0 %1219  ;;  %v1047_v19 = vpop.xlane.xlu1 %1046 }
 0x2d9   : > { %v3327_v53 = vmax.f32 %v1233_v50, %v1220_v17  ;;  %v1062_v50 = vmax.f32 %v4192_v37, %v1043_v27  ;;  %v1063_v17 = vmax.f32 %v1059_v0, %v1045_v34  ;;  %v1061_v27 = vmax.f32 %v3285_v4, %v1041_v54 }
 0x2da   : > { %v1064_v60 = vmax.f32 %v4193_v43, %v1047_v19  ;;  %v4194_v4 = vmax.f32 %v3277_v57, %v3322_v51 }
 0x2dc   : > { %v1601_v61 = vpop.xlane.xlu2 %1600 }
 0x2dd   : > { %v1618_v14 = vmax.f32 %v1614_v41, %v1601_v61 }
 0x2e0   : > { %v1603_v21 = vpop.xlane.xlu0 %1602  ;;  %v1774_v40 = vpop.xlane.xlu1 %1773 }
 0x2e1   : > { %v1619_v32 = vmax.f32 %v1615_v48, %v1603_v21  ;;  %v1791_v18 = vmax.f32 %v1787_v55, %v1774_v40 }
 0x2e4   : > { %v1049_v6 = vpop.xlane.xlu2 %1048 }
 0x2e5   : > { %v1065_v0 = vmax.f32 %v1061_v27, %v1049_v6 }
 0x2e8   : > { %v1222_v42 = vpop.xlane.xlu1 %1221  ;;  %v1051_v31 = vpop.xlane.xlu0 %1050 }
 0x2e9   : > { %v1066_v61 = vmax.f32 %v1062_v50, %v1051_v31  ;;  %v1238_v35 = vmax.f32 %v4194_v4, %v1222_v42 }
 0x2ec   : > { %v1776_v15 = vpop.xlane.xlu2 %1775 }
 0x2ed   : > { %v1792_v49 = vmax.f32 %v1788_v63, %v1776_v15 }
 0x2f0   : > { %v1605_v8 = vpop.xlane.xlu1 %1604  ;;  %v1778_v33 = vpop.xlane.xlu0 %1777 }
 0x2f1   : > { %v1620_v47 = vmax.f32 %v1616_v25, %v1605_v8  ;;  %v1793_v11 = vmax.f32 %v1789_v10, %v1778_v33 }
 0x2f4   : > { %v1224_v1 = vpop.xlane.xlu2 %1223 }
 0x2f5   : > { %v1239_v48 = vmax.f32 %v1235_v46, %v1224_v1 }
 0x2f8   : > { %v1226_v41 = vpop.xlane.xlu0 %1225  ;;  %v1053_v58 = vpop.xlane.xlu1 %1052 }
 0x2f9   : > { %v1240_v55 = vmax.f32 %v1236_v26, %v1226_v41  ;;  %v1067_v21 = vmax.f32 %v1063_v17, %v1053_v58 }
 0x2fb   : > { %v1243_v40 = vmax.f32 %v1239_v48, %v1240_v55  ;;  %v1070_v5 = vmax.f32 %v1066_v61, %v1067_v21 }
 0x2fc   : > { %v1607_v22 = vpop.xlane.xlu2 %1606 }
 0x2fd   : > { %v1621_v63 = vmax.f32 %v1617_v30, %v1607_v22 }
 0x2ff   : > { %v1624_v15 = vmax.f32 %v1620_v47, %v1621_v63 }
 0x300   : > { %v1609_v13 = vpop.xlane.xlu0 %1608  ;;  %v1780_v8 = vpop.xlane.xlu1 %1779 }
 0x301   : > { %v1622_v10 = vmax.f32 %v1618_v14, %v1609_v13  ;;  %v1794_v25 = vmax.f32 %v1790_v23, %v1780_v8 }
 0x303   : > { %v1797_v33 = vmax.f32 %v1793_v11, %v1794_v25 }
 0x304   : > { %v1055_v29 = vpop.xlane.xlu2 %1054 }
 0x305   : > { %v1068_v46 = vmax.f32 %v1064_v60, %v1055_v29 }
 0x308   : > { %v1228_v26 = vpop.xlane.xlu1 %1227  ;;  %v1057_v34 = vpop.xlane.xlu0 %1056 }
 0x309   : > { %v1069_v31 = vmax.f32 %v1065_v0, %v1057_v34  ;;  %v1241_v29 = vmax.f32 %v3327_v53, %v1228_v26 }
 0x30b   : > { %v1071_v1 = vmax.f32 %v1068_v46, %v1069_v31 }
 0x30c   : > { %v1782_v22 = vpop.xlane.xlu2 %1781 }
 0x30d   : > { %v1072_v30 = vmax.f32 %v1070_v5, %v1071_v1  ;;  %v1795_v14 = vmax.f32 %v1791_v18, %v1782_v22 }
 0x30f   : > { %v1073_v47 = vrot.slane %v1072_v30, 4 }
 0x310   : > { %v1611_v37 = vpop.xlane.xlu1 %1610  ;;  %v1784_v13 = vpop.xlane.xlu0 %1783 }
 0x311   : > { %v1074_v23 = vmax.f32 %v1072_v30, %v1073_v47  ;;  %v1623_v11 = vmax.f32 %v1619_v32, %v1611_v37  ;;  %v1796_v50 = vmax.f32 %v1792_v49, %v1784_v13 }
 0x313   : > { %v1075_v19 = vrot.slane %v1074_v23, 2  ;;  %v1625_v6 = vmax.f32 %v1622_v10, %v1623_v11  ;;  %v1798_v54 = vmax.f32 %v1795_v14, %v1796_v50 }
 0x314   : > { %v1230_v56 = vpop.xlane.xlu2 %1229 }
 0x315   : > { %v1076_v17 = vmax.f32 %v1074_v23, %v1075_v19  ;;  %v3340_v41 = vmax.f32 %v1624_v15, %v1625_v6  ;;  %v3342_v5 = vmax.f32 %v1797_v33, %v1798_v54  ;;  %v1242_v58 = vmax.f32 %v1238_v35, %v1230_v56 }
 0x317   : > { %v1077_v61 = vrot.slane %v1076_v17, 1  ;;  %v1244_v18 = vmax.f32 %v1241_v29, %v1242_v58  ;;  %v1800_v13 = vrot.slane %v3342_v5, 4  ;;  %v1627_v23 = vrot.slane %v3340_v41, 4 }
 0x319   : > { %v3344_v32 = vmax.f32 %v1076_v17, %v1077_v61  ;;  %v1245_v49 = vmax.f32 %v1243_v40, %v1244_v18  ;;  %v1801_v50 = vmax.f32 %v3342_v5, %v1800_v13  ;;  %v1628_v35 = vmax.f32 %v3340_v41, %v1627_v23  ;;  %v4196_v5 = vld [vmem:[#allocation51_spill] sm:$0xff] }
 0x31b   : > { %v3348_v57 = vsub.f32 %v3101_v7, %v3344_v32  ;;  %v3352_v51 = vsub.f32 %v3091_v3, %v3344_v32  ;;  %v3356_v53 = vsub.f32 %v3076_v62, %v3344_v32  ;;  %v3363_v21 = vsub.f32 %v3140_v20, %v3344_v32 }
 0x31c   : > { %v3367_v3 = vsub.f32 %v3129_v16, %v3344_v32  ;;  %v3371_v62 = vsub.f32 %v3116_v12, %v3344_v32  ;;  %v1246_v10 = vrot.slane %v1245_v49, 4  ;;  %v3378_v16 = vsub.f32 %v3176_v44, %v3344_v32 }
 0x31d   : > { %v1099_v42 = vmul.f32 1.442695, %v3348_v57  ;;  %v1097_v48 = vmul.f32 1.442695, %v3352_v51  ;;  %v1095_v55 = vmul.f32 1.442695, %v3356_v53  ;;  %v3382_v12 = vsub.f32 %v3165_v28, %v3344_v32 }
 0x31e   : > { %v1105_v7 = vmul.f32 1.442695, %v3363_v21  ;;  %v1103_v40 = vmul.f32 1.442695, %v3367_v3  ;;  %v1101_v15 = vmul.f32 1.442695, %v3371_v62  ;;  %v3386_v25 = vsub.f32 %v3152_v24, %v3344_v32 }
 0x31f   : > { %2249 = vpow2.f32 %v1099_v42  ;;  %v1247_v33 = vmax.f32 %v1245_v49, %v1246_v10  ;;  %v1111_v27 = vmul.f32 1.442695, %v3378_v16  ;;  %v1109_v43 = vmul.f32 1.442695, %v3382_v12 }
 0x320   : > { %2251 = vpow2.f32 %v1097_v48  ;;  %v1107_v44 = vmul.f32 1.442695, %v3386_v25  ;;  %v3393_v28 = vsub.f32 %v3214_v45, %v3344_v32  ;;  %v3397_v24 = vsub.f32 %v3201_v38, %v3344_v32 }
 0x321   : > { %2253 = vpow2.f32 %v1095_v55  ;;  %v1248_v34 = vrot.slane %v1247_v33, 2  ;;  %v3401_v46 = vsub.f32 %v3188_v36, %v3344_v32  ;;  %v3409_v36 = vsub.f32 %v3268_v39, %v3344_v32 }
 0x322   : > { %2255 = vpow2.f32 %v1105_v7  ;;  %v1117_v1 = vmul.f32 1.442695, %v3393_v28  ;;  %v1115_v22 = vmul.f32 1.442695, %v3397_v24  ;;  %v3414_v14 = vsub.f32 %v3251_v59, %v3344_v32 }
 0x323   : > { %2257 = vpow2.f32 %v1103_v40  ;;  %v1249_v31 = vmax.f32 %v1247_v33, %v1248_v34  ;;  %v1113_v45 = vmul.f32 1.442695, %v3401_v46  ;;  %4195 = vst [vmem:[#allocation55_spill] sm:$0xff] %v3409_v36  ;;  %v3418_v11 = vsub.f32 %v3232_v52, %v3344_v32 }
 0x324   : > { %2259 = vpow2.f32 %v1101_v15  ;;  %v1123_v39 = vmul.f32 1.442695, %v3409_v36  ;;  %v1121_v19 = vmul.f32 1.442695, %v3414_v14  ;;  %v1802_v56 = vrot.slane %v1801_v50, 2 }
 0x325   : > { %v2250_v63 = vpop.eup %2249  ;;  %2261 = vpow2.f32 %v1111_v27  ;;  %v1250_v38 = vrot.slane %v1249_v31, 1  ;;  %v1119_v54 = vmul.f32 1.442695, %v3418_v11  ;;  %v1629_v17 = vrot.slane %v1628_v35, 2 }
 0x326   : > { %v2252_v8 = vpop.eup %2251  ;;  %1131 = vadd.xlane.f32.xlu0 %v2250_v63  ;;  %2263 = vpow2.f32 %v1109_v43  ;;  %v3433_v58 = vsub.f32 %v4196_v5, %v3344_v32  ;;  %v1803_v61 = vmax.f32 %v1801_v50, %v1802_v56  ;;  %v4199_v32 = vld [vmem:[#allocation22_spill] sm:$0xff] }
 0x327   : > { %v2254_v20 = vpop.eup %2253  ;;  %1129 = vadd.xlane.f32.xlu2 %v2252_v8  ;;  %2265 = vpow2.f32 %v1107_v44  ;;  %v3421_v4 = vmax.f32 %v1249_v31, %v1250_v38  ;;  %v1630_v49 = vmax.f32 %v1628_v35, %v1629_v17  ;;  %v4201_v31 = vld [vmem:[#allocation12_spill] sm:$0xff] }
 0x328   : > { %1127 = vadd.xlane.f32.xlu1 %v2254_v20  ;;  %v2256_v60 = vpop.eup %2255  ;;  %2267 = vpow2.f32 %v1117_v1  ;;  %4197 = vst [vmem:[#allocation51_spill] sm:$0xff] %v3433_v58  ;;  %v1125_v55 = vmul.f32 1.442695, %v3433_v58  ;;  %v1804_v40 = vrot.slane %v1803_v61, 1  ;;  %v4200_v20 = vld [vmem:[#allocation10_spill] sm:$0xff]  ;;  %v4206_v35 = vld [vmem:[#allocation20_spill] sm:$0xff] }
 0x329   : > { %v2258_v0 = vpop.eup %2257  ;;  %2269 = vpow2.f32 %v1115_v22  ;;  %v1252_v52 = vsub.f32 %v3087_v2, %v3421_v4  ;;  %v1254_v41 = vsub.f32 %v3107_v9, %v3421_v4  ;;  %v4198_v9 = vld [vmem:[#allocation15_spill] sm:$0xff]  ;;  %v1631_v15 = vrot.slane %v1630_v49, 1 }
 0x32a   : > { %v2260_v26 = vpop.eup %2259  ;;  %2271 = vpow2.f32 %v1113_v45  ;;  %v1255_v63 = vsub.f32 %v4198_v9, %v3421_v4  ;;  %v1257_v8 = vsub.f32 %v4199_v32, %v3421_v4  ;;  %v1253_v10 = vsub.f32 %v4200_v20, %v3421_v4  ;;  %v4202_v22 = vld [vmem:[#allocation11_spill] sm:$0xff] }
 0x32b   : > { %v2262_v30 = vpop.eup %2261  ;;  %2273 = vpow2.f32 %v1123_v39  ;;  %v1268_v18 = vmul.f32 1.442695, %v1252_v52  ;;  %v1272_v42 = vmul.f32 1.442695, %v1254_v41  ;;  %v3442_v33 = vmax.f32 %v1803_v61, %v1804_v40  ;;  %v4204_v45 = vld [vmem:[#allocation19_spill] sm:$0xff] }
 0x32c   : > { %v2264_v47 = vpop.eup %2263  ;;  %2275 = vpow2.f32 %v1121_v19  ;;  %v1274_v27 = vmul.f32 1.442695, %v1255_v63  ;;  %v3444_v43 = vmax.f32 %v1630_v49, %v1631_v15 }
 0x32d   : > { %v2266_v37 = vpop.eup %2265  ;;  %2277 = vpow2.f32 %v1119_v54  ;;  %v1807_v1 = vsub.f32 %v4201_v31, %v3442_v33  ;;  %v1810_v19 = vsub.f32 %v4206_v35, %v3442_v33 }
 0x32e   : > { %1137 = vadd.xlane.f32.xlu0 %v2256_v60  ;;  %v2268_v6 = vpop.eup %2267  ;;  %2279 = vpow2.f32 %v1268_v18  ;;  %v1278_v60 = vmul.f32 1.442695, %v1257_v8  ;;  %v4211_v18 = vld [vmem:[#allocation23_spill] sm:$0xff]  ;;  %v4217_v8 = vld [vmem:[#allocation26_spill] sm:$0xff] }
 0x32f   : > { %1135 = vadd.xlane.f32.xlu2 %v2258_v0  ;;  %v2270_v59 = vpop.eup %2269  ;;  %2281 = vpow2.f32 %v1272_v42  ;;  %v1270_v0 = vmul.f32 1.442695, %v1253_v10  ;;  %v1830_v56 = vmul.f32 1.442695, %v1810_v19  ;;  %v1811_v49 = vsub.f32 %v4211_v18, %v3442_v33  ;;  %v4212_v42 = vld [vmem:[#allocation28_spill] sm:$0xff]  ;;  %v4218_v10 = vld [vmem:[#allocation31_spill] sm:$0xff] }
 0x330   : > { %1133 = vadd.xlane.f32.xlu1 %v2260_v26  ;;  %v2272_v29 = vpop.eup %2271  ;;  %2283 = vpow2.f32 %v1125_v55  ;;  %v4213_v55 = vld [vmem:[#allocation13_spill] sm:$0xff]  ;;  %v1812_v20 = vsub.f32 %v4217_v8, %v3442_v33  ;;  %v4225_v19 = vld [vmem:[#allocation18_spill] sm:$0xff]  ;;  %v4229_v18 = vld [vmem:[#allocation32_spill] sm:$0xff] }
 0x331   : > { %v2274_v48 = vpop.eup %2273  ;;  %2285 = vpow2.f32 %v1274_v27  ;;  %v1260_v27 = vsub.f32 %v4218_v10, %v3421_v4 }
 0x332   : > { %v2276_v7 = vpop.eup %2275  ;;  %2287 = vpow2.f32 %v1278_v60  ;;  %v4219_v60 = vld [vmem:[#allocation16_spill] sm:$0xff] }
 0x333   : > { %v2278_v2 = vpop.eup %2277  ;;  %2289 = vpow2.f32 %v1270_v0  ;;  %v3506_v0 = vsub.f32 %v4219_v60, %v3444_v43  ;;  %v1284_v31 = vmul.f32 1.442695, %v1260_v27  ;;  %v4235_v27 = vld [vmem:[#allocation35_spill] sm:$0xff] }
 0x334   : > { %v3446_v44 = vpop.eup %2279  ;;  %v1815_v60 = vsub.f32 %v4235_v27, %v3442_v33  ;;  %v4247_v27 = vld [vmem:[#allocation41_spill] sm:$0xff] }
 0x335   : > { %v3448_v26 = vpop.eup %2281 }
 0x336   : > { %1143 = vadd.xlane.f32.xlu0 %v2262_v30  ;;  %v2284_v34 = vpop.eup %2283  ;;  %v3456_v30 = vsub.f32 %v4202_v22, %v3444_v43  ;;  %v1655_v22 = vmul.f32 1.442695, %v3506_v0 }
 0x337   : > { %1141 = vadd.xlane.f32.xlu2 %v2264_v47  ;;  %v1256_v47 = vsub.f32 %v4204_v45, %v3421_v4  ;;  %v3461_v38 = vpop.eup %2285 }
 0x338   : > { %1139 = vadd.xlane.f32.xlu1 %v2266_v37  ;;  %4203 = vst [vmem:[#allocation15_spill] sm:$0xff] %v3456_v30  ;;  %v1824_v37 = vmul.f32 1.442695, %v1807_v1  ;;  %v1651_v13 = vmul.f32 1.442695, %v3456_v30  ;;  %v3463_v50 = vpop.eup %2287 }
 0x339   : > { %v1276_v23 = vmul.f32 1.442695, %v1256_v47  ;;  %4205 = vst [vmem:[#allocation22_spill] sm:$0xff] %v3463_v50  ;;  %v3466_v39 = vpop.eup %2289 }
 0x33a   : > { %2291 = vpow2.f32 %v1824_v37  ;;  %v4223_v37 = vld [vmem:[#allocation29_spill] sm:$0xff] }
 0x33b   : > { %2293 = vpow2.f32 %v1651_v13  ;;  %v1813_v13 = vsub.f32 %v4223_v37, %v3442_v33  ;;  %v1840_v37 = vmul.f32 1.442695, %v1815_v60  ;;  %v1817_v60 = vsub.f32 %v4247_v27, %v3442_v33 }
 0x33c   : > { %2295 = vpow2.f32 %v1276_v23  ;;  %v4224_v23 = vld [vmem:[#allocation34_spill] sm:$0xff] }
 0x33d   : > { %2297 = vpow2.f32 %v1830_v56  ;;  %v1261_v35 = vsub.f32 %v4224_v23, %v3421_v4 }
 0x33e   : > { %1149 = vadd.xlane.f32.xlu0 %v2268_v6  ;;  %v4207_v6 = vld [vmem:[#allocation25_spill] sm:$0xff] }
 0x33f   : > { %1147 = vadd.xlane.f32.xlu2 %v2270_v59  ;;  %v1258_v54 = vsub.f32 %v4207_v6, %v3421_v4  ;;  %v4208_v59 = vld [vmem:[#allocation8_spill] sm:$0xff]  ;;  %4220 = vst [vmem:[#allocation25_spill] sm:$0xff] %v3506_v0  ;;  %v3521_v6 = vsub.f32 %v4225_v19, %v3444_v43 }
 0x340   : > { %1145 = vadd.xlane.f32.xlu1 %v2272_v29  ;;  %v3476_v29 = vsub.f32 %v4208_v59, %v3444_v43  ;;  %v3478_v17 = vpop.eup %2291  ;;  %v1286_v59 = vmul.f32 1.442695, %v1261_v35 }
 0x341   : > { %v1280_v52 = vmul.f32 1.442695, %v1258_v54  ;;  %4210 = vst [vmem:[#allocation12_spill] sm:$0xff] %v3478_v17  ;;  %v2294_v5 = vpop.eup %2293  ;;  %v1836_v54 = vmul.f32 1.442695, %v1813_v13 }
 0x342   : > { %4209 = vst [vmem:[#allocation10_spill] sm:$0xff] %v3476_v29  ;;  %v1649_v41 = vmul.f32 1.442695, %v3476_v29  ;;  %v3482_v61 = vpop.eup %2295 }
 0x343   : > { %2299 = vpow2.f32 %v1280_v52  ;;  %v3493_v9 = vpop.eup %2297  ;;  %4226 = vst [vmem:[#allocation28_spill] sm:$0xff] %v3521_v6  ;;  %v1657_v52 = vmul.f32 1.442695, %v3521_v6 }
 0x344   : > { %2301 = vpow2.f32 %v1649_v41  ;;  %4215 = vst [vmem:[#allocation19_spill] sm:$0xff] %v3493_v9 }
 0x346   : > { %1155 = vadd.xlane.f32.xlu0 %v2274_v48  ;;  %v1259_v48 = vsub.f32 %v4212_v42, %v3421_v4  ;;  %v4230_v42 = vld [vmem:[#allocation37_spill] sm:$0xff] }
 0x347   : > { %1153 = vadd.xlane.f32.xlu2 %v2276_v7  ;;  %v3491_v7 = vsub.f32 %v4213_v55, %v3444_v43  ;;  %v4231_v55 = vld [vmem:[#allocation21_spill] sm:$0xff] }
 0x348   : > { %1151 = vadd.xlane.f32.xlu1 %v2278_v2  ;;  %v1832_v2 = vmul.f32 1.442695, %v1811_v49  ;;  %v1282_v40 = vmul.f32 1.442695, %v1259_v48  ;;  %v1814_v49 = vsub.f32 %v4229_v18, %v3442_v33  ;;  %v1262_v48 = vsub.f32 %v4230_v42, %v3421_v4 }
 0x349   : > { %4214 = vst [vmem:[#allocation11_spill] sm:$0xff] %v3491_v7  ;;  %v1653_v63 = vmul.f32 1.442695, %v3491_v7  ;;  %v3496_v15 = vpop.eup %2299 }
 0x34a   : > { %4216 = vst [vmem:[#allocation20_spill] sm:$0xff] %v3496_v15  ;;  %v2302_v32 = vpop.eup %2301  ;;  %2303 = vpow2.f32 %v1832_v2  ;;  %v3536_v2 = vsub.f32 %v4231_v55, %v3444_v43 }
 0x34b   : > { %2305 = vpow2.f32 %v1282_v40  ;;  %v1838_v40 = vmul.f32 1.442695, %v1814_v49  ;;  %v4243_v49 = vld [vmem:[#allocation27_spill] sm:$0xff] }
 0x34c   : > { %2307 = vpow2.f32 %v1653_v63  ;;  %4232 = vst [vmem:[#allocation31_spill] sm:$0xff] %v3536_v2  ;;  %v1288_v63 = vmul.f32 1.442695, %v1262_v48  ;;  %v1659_v8 = vmul.f32 1.442695, %v3536_v2  ;;  %v3566_v42 = vsub.f32 %v4243_v49, %v3444_v43 }
 0x34e   : > { %1300 = vadd.xlane.f32.xlu0 %v3446_v44  ;;  %4244 = vst [vmem:[#allocation37_spill] sm:$0xff] %v3566_v42 }
 0x34f   : > { %1304 = vadd.xlane.f32.xlu2 %v3448_v26 }
 0x350   : > { %1157 = vadd.xlane.f32.xlu1 %v2284_v34  ;;  %v1834_v34 = vmul.f32 1.442695, %v1812_v20  ;;  %v3508_v1 = vpop.eup %2303 }
 0x351   : > { %4221 = vst [vmem:[#allocation8_spill] sm:$0xff] %v3508_v1  ;;  %v3511_v45 = vpop.eup %2305 }
 0x352   : > { %4222 = vst [vmem:[#allocation23_spill] sm:$0xff] %v3511_v45  ;;  %v2308_v47 = vpop.eup %2307  ;;  %2309 = vpow2.f32 %v1834_v34  ;;  %v4236_v34 = vld [vmem:[#allocation40_spill] sm:$0xff] }
 0x353   : > { %2311 = vpow2.f32 %v1284_v31  ;;  %v1263_v31 = vsub.f32 %v4236_v34, %v3421_v4  ;;  %v4248_v34 = vld [vmem:[#allocation9_spill] sm:$0xff] }
 0x354   : > { %2313 = vpow2.f32 %v1655_v22  ;;  %v4237_v22 = vld [vmem:[#allocation24_spill] sm:$0xff] }
 0x355   : > { %2315 = vpow2.f32 %v1836_v54  ;;  %v1290_v13 = vmul.f32 1.442695, %v1263_v31  ;;  %v1806_v31 = vsub.f32 %v4248_v34, %v3442_v33 }
 0x356   : > { %1306 = vadd.xlane.f32.xlu0 %v3461_v38  ;;  %2317 = vpow2.f32 %v1286_v59  ;;  %v4241_v59 = vld [vmem:[#allocation38_spill] sm:$0xff] }
 0x357   : > { %1310 = vadd.xlane.f32.xlu2 %v3463_v50  ;;  %2319 = vpow2.f32 %v1657_v52  ;;  %v1816_v52 = vsub.f32 %v4241_v59, %v3442_v33 }
 0x358   : > { %1302 = vadd.xlane.f32.xlu1 %v3466_v39  ;;  %v3523_v56 = vpop.eup %2309  ;;  %2321 = vpow2.f32 %v1838_v40 }
 0x359   : > { %4227 = vst [vmem:[#allocation13_spill] sm:$0xff] %v3523_v56  ;;  %v3526_v41 = vpop.eup %2311  ;;  %2323 = vpow2.f32 %v1288_v63  ;;  %v1842_v48 = vmul.f32 1.442695, %v1816_v52  ;;  %v1663_v63 = vmul.f32 1.442695, %v3566_v42 }
 0x35a   : > { %4228 = vst [vmem:[#allocation26_spill] sm:$0xff] %v3526_v41  ;;  %2325 = vpow2.f32 %v1659_v8 }
 0x35b   : > { %2327 = vpow2.f32 %v1840_v37 }
 0x35c   : > { %2329 = vpow2.f32 %v1290_v13  ;;  %v1844_v13 = vmul.f32 1.442695, %v1817_v60 }
 0x35e   : > { %1856 = vadd.xlane.f32.xlu0 %v3478_v17 }
 0x35f   : > { %1683 = vadd.xlane.f32.xlu2 %v2294_v5  ;;  %v2314_v5 = vpop.eup %2313 }
 0x360   : > { %1308 = vadd.xlane.f32.xlu1 %v3482_v61 }
 0x366   : > { %1862 = vadd.xlane.f32.xlu0 %v3493_v9 }
 0x367   : > { %1312 = vadd.xlane.f32.xlu2 %v3496_v15 }
 0x368   : > { %1681 = vadd.xlane.f32.xlu1 %v2302_v32  ;;  %v3538_v32 = vpop.eup %2315 }
 0x369   : > { %4233 = vst [vmem:[#allocation16_spill] sm:$0xff] %v3538_v32  ;;  %v3541_v20 = vpop.eup %2317 }
 0x36a   : > { %4234 = vst [vmem:[#allocation29_spill] sm:$0xff] %v3541_v20  ;;  %v2320_v10 = vpop.eup %2319 }
 0x36b   : > { %v3553_v23 = vpop.eup %2321 }
 0x36c   : > { %4239 = vst [vmem:[#allocation18_spill] sm:$0xff] %v3553_v23  ;;  %v3556_v19 = vpop.eup %2323 }
 0x36d   : > { %4240 = vst [vmem:[#allocation32_spill] sm:$0xff] %v3556_v19  ;;  %v2326_v54 = vpop.eup %2325 }
 0x36e   : > { %1864 = vadd.xlane.f32.xlu0 %v3508_v1  ;;  %v3568_v40 = vpop.eup %2327 }
 0x36f   : > { %1314 = vadd.xlane.f32.xlu2 %v3511_v45  ;;  %4245 = vst [vmem:[#allocation21_spill] sm:$0xff] %v3568_v40  ;;  %v3571_v8 = vpop.eup %2329 }
 0x370   : > { %1685 = vadd.xlane.f32.xlu1 %v2308_v47  ;;  %v3551_v47 = vsub.f32 %v4237_v22, %v3444_v43  ;;  %4246 = vst [vmem:[#allocation35_spill] sm:$0xff] %v3571_v8  ;;  %v4249_v22 = vld [vmem:[#allocation30_spill] sm:$0xff] }
 0x371   : > { %v3581_v37 = vsub.f32 %v4249_v22, %v3444_v43 }
 0x372   : > { %4238 = vst [vmem:[#allocation34_spill] sm:$0xff] %v3551_v47  ;;  %v1661_v35 = vmul.f32 1.442695, %v3551_v47 }
 0x373   : > { %4250 = vst [vmem:[#allocation40_spill] sm:$0xff] %v3581_v37  ;;  %v1665_v59 = vmul.f32 1.442695, %v3581_v37 }
 0x374   : > { %2331 = vpow2.f32 %v1661_v35  ;;  %v1822_v35 = vmul.f32 1.442695, %v1806_v31 }
 0x375   : > { %2333 = vpow2.f32 %v1842_v48  ;;  %v4254_v48 = vld [vmem:[#allocation17_spill] sm:$0xff] }
 0x376   : > { %1866 = vadd.xlane.f32.xlu0 %v3523_v56 }
 0x377   : > { %1316 = vadd.xlane.f32.xlu2 %v3526_v41 }
 0x378   : > { %1687 = vadd.xlane.f32.xlu1 %v2314_v5  ;;  %v4242_v5 = vld [vmem:[#allocation43_spill] sm:$0xff] }
 0x379   : > { %v1264_v18 = vsub.f32 %v4242_v5, %v3421_v4 }
 0x37b   : > { %v1292_v55 = vmul.f32 1.442695, %v1264_v18  ;;  %v4253_v18 = vld [vmem:[#allocation44_spill] sm:$0xff] }
 0x37c   : > { %v1818_v49 = vsub.f32 %v4253_v18, %v3442_v33 }
 0x37d   : > { %2335 = vpow2.f32 %v1292_v55  ;;  %v1809_v55 = vsub.f32 %v4254_v48, %v3442_v33 }
 0x37e   : > { %1868 = vadd.xlane.f32.xlu0 %v3538_v32  ;;  %2337 = vpow2.f32 %v1663_v63  ;;  %v1846_v31 = vmul.f32 1.442695, %v1818_v49  ;;  %v4259_v49 = vld [vmem:[#allocation46_spill] sm:$0xff] }
 0x37f   : > { %1318 = vadd.xlane.f32.xlu2 %v3541_v20  ;;  %2339 = vpow2.f32 %v1844_v13  ;;  %v1828_v37 = vmul.f32 1.442695, %v1809_v55  ;;  %v1265_v48 = vsub.f32 %v4259_v49, %v3421_v4 }
 0x380   : > { %1689 = vadd.xlane.f32.xlu1 %v2320_v10  ;;  %v2332_v10 = vpop.eup %2331  ;;  %2341 = vpow2.f32 %v1822_v35 }
 0x381   : > { %2343 = vpow2.f32 %v1665_v59  ;;  %v4258_v59 = vld [vmem:[#allocation47_spill] sm:$0xff]  ;;  %v1294_v2 = vmul.f32 1.442695, %v1265_v48 }
 0x382   : > { %2345 = vpow2.f32 %v1846_v31  ;;  %v1819_v18 = vsub.f32 %v4258_v59, %v3442_v33 }
 0x383   : > { %2347 = vpow2.f32 %v1828_v37 }
 0x386   : > { %1870 = vadd.xlane.f32.xlu0 %v3553_v23 }
 0x387   : > { %1320 = vadd.xlane.f32.xlu2 %v3556_v19 }
 0x388   : > { %1691 = vadd.xlane.f32.xlu1 %v2326_v54  ;;  %v3583_v54 = vpop.eup %2333 }
 0x389   : > { %4251 = vst [vmem:[#allocation24_spill] sm:$0xff] %v3583_v54  ;;  %v3586_v52 = vpop.eup %2335 }
 0x38a   : > { %4252 = vst [vmem:[#allocation38_spill] sm:$0xff] %v3586_v52  ;;  %v2338_v5 = vpop.eup %2337 }
 0x38b   : > { %v3596_v42 = vpop.eup %2339 }
 0x38c   : > { %4256 = vst [vmem:[#allocation43_spill] sm:$0xff] %v3596_v42  ;;  %v3598_v47 = vpop.eup %2341 }
 0x38d   : > { %4257 = vst [vmem:[#allocation27_spill] sm:$0xff] %v3598_v47  ;;  %v2344_v35 = vpop.eup %2343 }
 0x38e   : > { %1872 = vadd.xlane.f32.xlu0 %v3568_v40  ;;  %v3610_v31 = vpop.eup %2345 }
 0x38f   : > { %1322 = vadd.xlane.f32.xlu2 %v3571_v8  ;;  %4262 = vst [vmem:[#allocation9_spill] sm:$0xff] %v3610_v31 }
 0x390   : > { %1693 = vadd.xlane.f32.xlu1 %v2332_v10  ;;  %v4255_v10 = vld [vmem:[#allocation14_spill] sm:$0xff] }
 0x391   : > { %v1808_v27 = vsub.f32 %v4255_v10, %v3442_v33  ;;  %v4260_v10 = vld [vmem:[#allocation33_spill] sm:$0xff] }
 0x393   : > { %v1826_v13 = vmul.f32 1.442695, %v1808_v27  ;;  %v3608_v27 = vsub.f32 %v4260_v10, %v3444_v43 }
 0x395   : > { %2349 = vpow2.f32 %v1826_v13  ;;  %4261 = vst [vmem:[#allocation41_spill] sm:$0xff] %v3608_v27  ;;  %v1667_v59 = vmul.f32 1.442695, %v3608_v27  ;;  %v4265_v13 = vld [vmem:[#allocation49_spill] sm:$0xff] }
 0x396   : > { %1874 = vadd.xlane.f32.xlu0 %v3583_v54  ;;  %v1820_v10 = vsub.f32 %v4265_v13, %v3442_v33 }
 0x397   : > { %1324 = vadd.xlane.f32.xlu2 %v3586_v52 }
 0x398   : > { %1695 = vadd.xlane.f32.xlu1 %v2338_v5  ;;  %v1850_v0 = vmul.f32 1.442695, %v1820_v10 }
 0x399   : > { %v1132_v63 = vpop.xlane.xlu0 %1131 }
 0x39a   : > { %v1130_v60 = vpop.xlane.xlu2 %1129 }
 0x39b   : > { %v1128_v34 = vpop.xlane.xlu1 %1127 }
 0x39c   : > { %v1159_v22 = vadd.f32 %v1130_v60, %v1128_v34  ;;  %v1848_v34 = vmul.f32 1.442695, %v1819_v18 }
 0x39e   : > { %v1160_v5 = vadd.f32 %v1159_v22, %v1132_v63  ;;  %1876 = vadd.xlane.f32.xlu0 %v3596_v42  ;;  %2351 = vpow2.f32 %v1848_v34 }
 0x39f   : > { %1854 = vadd.xlane.f32.xlu2 %v3598_v47  ;;  %2353 = vpow2.f32 %v1294_v2 }
 0x3a0   : > { %1697 = vadd.xlane.f32.xlu1 %v2344_v35  ;;  %v3613_v35 = vpop.eup %2347  ;;  %2355 = vpow2.f32 %v1667_v59  ;;  %v4271_v59 = vld [vmem:[#allocation53_spill] sm:$0xff] }
 0x3a1   : > { %v1138_v55 = vpop.xlane.xlu0 %1137  ;;  %4263 = vst [vmem:[#allocation30_spill] sm:$0xff] %v3613_v35  ;;  %v3616_v49 = vpop.eup %2349  ;;  %2357 = vpow2.f32 %v1850_v0 }
 0x3a2   : > { %v1136_v63 = vpop.xlane.xlu2 %1135  ;;  %4264 = vst [vmem:[#allocation44_spill] sm:$0xff] %v3616_v49 }
 0x3a3   : > { %v1134_v60 = vpop.xlane.xlu1 %1133 }
 0x3a4   : > { %v1161_v22 = vadd.f32 %v1160_v5, %v1134_v60  ;;  %v4266_v5 = vld [vmem:[#allocation50_spill] sm:$0xff]  ;;  %v3628_v30 = vpop.eup %2351 }
 0x3a5   : > { %v1266_v48 = vsub.f32 %v4266_v5, %v3421_v4  ;;  %4269 = vst [vmem:[#allocation14_spill] sm:$0xff] %v3628_v30  ;;  %v1821_v5 = vsub.f32 %v4271_v59, %v3442_v33 }
 0x3a6   : > { %v1162_v37 = vadd.f32 %v1161_v22, %v1136_v63  ;;  %1878 = vadd.xlane.f32.xlu0 %v3610_v31  ;;  %v4267_v63 = vld [vmem:[#allocation36_spill] sm:$0xff] }
 0x3a7   : > { %1860 = vadd.xlane.f32.xlu2 %v3613_v35  ;;  %v3626_v22 = vsub.f32 %v4267_v63, %v3444_v43  ;;  %v1296_v7 = vmul.f32 1.442695, %v1266_v48  ;;  %v4273_v48 = vld [vmem:[#allocation39_spill] sm:$0xff]  ;;  %v1852_v29 = vmul.f32 1.442695, %v1821_v5 }
 0x3a8   : > { %v1163_v18 = vadd.f32 %v1162_v37, %v1138_v55  ;;  %1858 = vadd.xlane.f32.xlu1 %v3616_v49  ;;  %v3631_v37 = vpop.eup %2353 }
 0x3a9   : > { %v1144_v60 = vpop.xlane.xlu0 %1143  ;;  %4268 = vst [vmem:[#allocation17_spill] sm:$0xff] %v3626_v22  ;;  %v1669_v55 = vmul.f32 1.442695, %v3626_v22  ;;  %v2356_v13 = vpop.eup %2355  ;;  %2359 = vpow2.f32 %v1296_v7 }
 0x3aa   : > { %v1142_v27 = vpop.xlane.xlu2 %1141  ;;  %4270 = vst [vmem:[#allocation47_spill] sm:$0xff] %v3631_v37  ;;  %v3643_v31 = vpop.eup %2357 }
 0x3ab   : > { %v1140_v6 = vpop.xlane.xlu1 %1139  ;;  %2361 = vpow2.f32 %v1669_v55  ;;  %4275 = vst [vmem:[#allocation33_spill] sm:$0xff] %v3643_v31  ;;  %v4277_v55 = vld [vmem:[#allocation48_spill] sm:$0xff] }
 0x3ac   : > { %v1164_v34 = vadd.f32 %v1163_v18, %v1140_v6  ;;  %v4272_v6 = vld [vmem:[#allocation54_spill] sm:$0xff]  ;;  %2363 = vpow2.f32 %v1852_v29 }
 0x3ad   : > { %v1267_v10 = vsub.f32 %v4272_v6, %v3421_v4 }
 0x3ae   : > { %v1165_v2 = vadd.f32 %v1164_v34, %v1142_v27  ;;  %1880 = vadd.xlane.f32.xlu0 %v3628_v30  ;;  %v3641_v27 = vsub.f32 %v4273_v48, %v3444_v43 }
 0x3af   : > { %1326 = vadd.xlane.f32.xlu2 %v3631_v37  ;;  %v1298_v0 = vmul.f32 1.442695, %v1267_v10 }
 0x3b0   : > { %v1166_v63 = vadd.f32 %v1165_v2, %v1144_v60  ;;  %1699 = vadd.xlane.f32.xlu1 %v2356_v13  ;;  %4274 = vst [vmem:[#allocation46_spill] sm:$0xff] %v3641_v27  ;;  %v1671_v33 = vmul.f32 1.442695, %v3641_v27  ;;  %v3646_v60 = vpop.eup %2359  ;;  %v3652_v2 = vsub.f32 %v4277_v55, %v3444_v43 }
 0x3b1   : > { %v1150_v18 = vpop.xlane.xlu0 %1149  ;;  %4276 = vst [vmem:[#allocation49_spill] sm:$0xff] %v3646_v60  ;;  %v2362_v4 = vpop.eup %2361  ;;  %2365 = vpow2.f32 %v1298_v0 }
 0x3b2   : > { %v1148_v34 = vpop.xlane.xlu2 %1147  ;;  %4278 = vst [vmem:[#allocation50_spill] sm:$0xff] %v3652_v2  ;;  %2367 = vpow2.f32 %v1671_v33  ;;  %v1677_v29 = vmul.f32 1.442695, %v3652_v2 }
 0x3b3   : > { %v1146_v22 = vpop.xlane.xlu1 %1145 }
 0x3b4   : > { %v1167_v30 = vadd.f32 %v1166_v63, %v1146_v22  ;;  %v4279_v22 = vld [vmem:[#allocation45_spill] sm:$0xff]  ;;  %2369 = vpow2.f32 %v1677_v29 }
 0x3b5   : > { %v3656_v59 = vsub.f32 %v4279_v22, %v3444_v43 }
 0x3b6   : > { %v1168_v7 = vadd.f32 %v1167_v30, %v1148_v34  ;;  %1882 = vadd.xlane.f32.xlu0 %v3643_v31  ;;  %v4281_v30 = vld [vmem:[#allocation42_spill] sm:$0xff] }
 0x3b7   : > { %1328 = vadd.xlane.f32.xlu2 %v3646_v60  ;;  %4280 = vst [vmem:[#allocation36_spill] sm:$0xff] %v3656_v59  ;;  %v3660_v63 = vsub.f32 %v4281_v30, %v3444_v43  ;;  %v1675_v34 = vmul.f32 1.442695, %v3656_v59 }
 0x3b8   : > { %v1169_v13 = vadd.f32 %v1168_v7, %v1150_v18  ;;  %1701 = vadd.xlane.f32.xlu1 %v2362_v4  ;;  %v3664_v18 = vpop.eup %2363 }
 0x3b9   : > { %v1156_v5 = vpop.xlane.xlu0 %1155  ;;  %4282 = vst [vmem:[#allocation53_spill] sm:$0xff] %v3660_v63  ;;  %v1673_v0 = vmul.f32 1.442695, %v3660_v63  ;;  %v3667_v7 = vpop.eup %2365  ;;  %2371 = vpow2.f32 %v1675_v34 }
 0x3ba   : > { %v1154_v6 = vpop.xlane.xlu2 %1153  ;;  %4283 = vst [vmem:[#allocation54_spill] sm:$0xff] %v3664_v18  ;;  %v2368_v33 = vpop.eup %2367 }
 0x3bb   : > { %v1152_v10 = vpop.xlane.xlu1 %1151  ;;  %4284 = vst [vmem:[#allocation39_spill] sm:$0xff] %v3667_v7  ;;  %2373 = vpow2.f32 %v1673_v0  ;;  %v2370_v63 = vpop.eup %2369 }
 0x3bc   : > { %v1170_v48 = vadd.f32 %v1169_v13, %v1152_v10  ;;  %v4285_v13 = vld [vmem:[#allocation52_spill] sm:$0xff] }
 0x3bd   : > { %v3673_v30 = vsub.f32 %v4285_v13, %v3444_v43 }
 0x3be   : > { %v1171_v4 = vadd.f32 %v1170_v48, %v1154_v6  ;;  %1884 = vadd.xlane.f32.xlu0 %v3664_v18 }
 0x3bf   : > { %1330 = vadd.xlane.f32.xlu2 %v3667_v7  ;;  %4286 = vst [vmem:[#allocation48_spill] sm:$0xff] %v3673_v30  ;;  %v1679_v6 = vmul.f32 1.442695, %v3673_v30  ;;  %v2372_v48 = vpop.eup %2371 }
 0x3c0   : > { %v1172_v55 = vadd.f32 %v1171_v4, %v1156_v5  ;;  %1703 = vadd.xlane.f32.xlu1 %v2368_v33 }
 0x3c1   : > { %v1301_v22 = vpop.xlane.xlu0 %1300  ;;  %v2374_v27 = vpop.eup %2373  ;;  %2375 = vpow2.f32 %v1679_v6 }
 0x3c2   : > { %v1305_v10 = vpop.xlane.xlu2 %1304 }
 0x3c3   : > { %v1158_v2 = vpop.xlane.xlu1 %1157 }
 0x3c4   : > { %v1173_v59 = vadd.f32 %v1172_v55, %v1158_v2 }
 0x3c6   : > { %1709 = vadd.xlane.f32.xlu0 %v2370_v63 }
 0x3c7   : > { %1707 = vadd.xlane.f32.xlu2 %v2372_v48  ;;  %v2376_v33 = vpop.eup %2375 }
 0x3c8   : > { %1705 = vadd.xlane.f32.xlu1 %v2374_v27 }
 0x3c9   : > { %v1307_v5 = vpop.xlane.xlu0 %1306 }
 0x3ca   : > { %v1311_v29 = vpop.xlane.xlu2 %1310 }
 0x3cb   : > { %v1303_v34 = vpop.xlane.xlu1 %1302 }
 0x3cc   : > { %v1332_v0 = vadd.f32 %v1303_v34, %v1301_v22 }
 0x3ce   : > { %v1333_v4 = vadd.f32 %v1332_v0, %v1305_v10 }
 0x3d0   : > { %v1334_v43 = vadd.f32 %v1333_v4, %v1307_v5  ;;  %1711 = vadd.xlane.f32.xlu1 %v2376_v33 }
 0x3d1   : > { %v1857_v13 = vpop.xlane.xlu0 %1856 }
 0x3d2   : > { %v1684_v18 = vpop.xlane.xlu2 %1683 }
 0x3d3   : > { %v1309_v2 = vpop.xlane.xlu1 %1308 }
 0x3d4   : > { %v1335_v55 = vadd.f32 %v1334_v43, %v1309_v2 }
 0x3d6   : > { %v1336_v31 = vadd.f32 %v1335_v55, %v1311_v29 }
 0x3d9   : > { %v1863_v30 = vpop.xlane.xlu0 %1862 }
 0x3da   : > { %v1313_v42 = vpop.xlane.xlu2 %1312 }
 0x3db   : > { %v1337_v63 = vadd.f32 %v1336_v31, %v1313_v42  ;;  %v1682_v54 = vpop.xlane.xlu1 %1681 }
 0x3dc   : > { %v1713_v48 = vadd.f32 %v1684_v18, %v1682_v54 }
 0x3e1   : > { %v1865_v27 = vpop.xlane.xlu0 %1864 }
 0x3e2   : > { %v1315_v40 = vpop.xlane.xlu2 %1314 }
 0x3e3   : > { %v1338_v6 = vadd.f32 %v1337_v63, %v1315_v40  ;;  %v1686_v23 = vpop.xlane.xlu1 %1685 }
 0x3e4   : > { %v1714_v32 = vadd.f32 %v1713_v48, %v1686_v23 }
 0x3e9   : > { %v1867_v22 = vpop.xlane.xlu0 %1866 }
 0x3ea   : > { %v1317_v10 = vpop.xlane.xlu2 %1316 }
 0x3eb   : > { %v1688_v34 = vpop.xlane.xlu1 %1687  ;;  %v1339_v19 = vadd.f32 %v1338_v6, %v1317_v10 }
 0x3ec   : > { %v1715_v5 = vadd.f32 %v1714_v32, %v1688_v34  ;;  %v1174_v34 = vrot.slane %v1173_v59, 4 }
 0x3ee   : > { %v1175_v47 = vadd.f32 %v1174_v34, %v1173_v59 }
 0x3f0   : > { %v1176_v8 = vrot.slane %v1175_v47, 2 }
 0x3f1   : > { %v1869_v0 = vpop.xlane.xlu0 %1868 }
 0x3f2   : > { %v1319_v4 = vpop.xlane.xlu2 %1318  ;;  %v1177_v45 = vadd.f32 %v1176_v8, %v1175_v47 }
 0x3f3   : > { %v1690_v33 = vpop.xlane.xlu1 %1689  ;;  %v1340_v41 = vadd.f32 %v1339_v19, %v1319_v4 }
 0x3f9   : > { %v1871_v56 = vpop.xlane.xlu0 %1870 }
 0x3fa   : > { %v1321_v43 = vpop.xlane.xlu2 %1320 }
 0x3fb   : > { %v1692_v29 = vpop.xlane.xlu1 %1691  ;;  %v1341_v15 = vadd.f32 %v1340_v41, %v1321_v43 }
 0x401   : > { %v1873_v2 = vpop.xlane.xlu0 %1872 }
 0x402   : > { %v1323_v55 = vpop.xlane.xlu2 %1322 }
 0x403   : > { %v1694_v42 = vpop.xlane.xlu1 %1693  ;;  %v1342_v50 = vadd.f32 %v1341_v15, %v1323_v55 }
 0x409   : > { %v1875_v31 = vpop.xlane.xlu0 %1874 }
 0x40a   : > { %v1325_v54 = vpop.xlane.xlu2 %1324 }
 0x40b   : > { %v1696_v18 = vpop.xlane.xlu1 %1695  ;;  %v1343_v59 = vadd.f32 %v1342_v50, %v1325_v54 }
 0x411   : > { %v1877_v1 = vpop.xlane.xlu0 %1876 }
 0x412   : > { %v1855_v40 = vpop.xlane.xlu2 %1854 }
 0x413   : > { %v1698_v63 = vpop.xlane.xlu1 %1697  ;;  %v1886_v48 = vadd.f32 %v1857_v13, %v1855_v40 }
 0x419   : > { %v1879_v23 = vpop.xlane.xlu0 %1878 }
 0x41a   : > { %v1861_v9 = vpop.xlane.xlu2 %1860 }
 0x41b   : > { %v1859_v35 = vpop.xlane.xlu1 %1858 }
 0x41c   : > { %v1887_v32 = vadd.f32 %v1886_v48, %v1859_v35 }
 0x41e   : > { %v1888_v49 = vadd.f32 %v1887_v32, %v1861_v9 }
 0x420   : > { %v1889_v17 = vadd.f32 %v1888_v49, %v1863_v30  ;;  %v1178_v49 = vrot.slane %v1177_v45, 1 }
 0x421   : > { %v1881_v58 = vpop.xlane.xlu0 %1880 }
 0x422   : > { %v1890_v7 = vadd.f32 %v1889_v17, %v1865_v27  ;;  %v1327_v60 = vpop.xlane.xlu2 %1326  ;;  %v1179_v32 = vadd.f32 %v1178_v49, %v1177_v45 }
 0x423   : > { %v1700_v37 = vpop.xlane.xlu1 %1699  ;;  %v1344_v17 = vadd.f32 %v1343_v59, %v1327_v60 }
 0x424   : > { %v1891_v52 = vadd.f32 %v1890_v7, %v1867_v22  ;;  %2377 = vlog2.f32 %v1179_v32 }
 0x426   : > { %v1892_v20 = vadd.f32 %v1891_v52, %v1869_v0  ;;  %v1716_v52 = vadd.f32 %v1715_v5, %v1690_v33 }
 0x428   : > { %v1893_v36 = vadd.f32 %v1892_v20, %v1871_v56  ;;  %v1717_v41 = vadd.f32 %v1716_v52, %v1692_v29 }
 0x429   : > { %v1883_v35 = vpop.xlane.xlu0 %1882 }
 0x42a   : > { %v1894_v13 = vadd.f32 %v1893_v36, %v1873_v2  ;;  %v1329_v40 = vpop.xlane.xlu2 %1328  ;;  %v1718_v8 = vadd.f32 %v1717_v41, %v1694_v42  ;;  %v2378_v4 = vpop.eup %2377 }
 0x42b   : > { %v1702_v9 = vpop.xlane.xlu1 %1701  ;;  %v1345_v7 = vadd.f32 %v1344_v17, %v1329_v40  ;;  %v1181_v33 = vmul.f32 0.6931472, %v2378_v4 }
 0x42c   : > { %v1895_v48 = vadd.f32 %v1894_v13, %v1875_v31  ;;  %v1719_v50 = vadd.f32 %v1718_v8, %v1696_v18  ;;  %v4288_v8 = vld [vmem:[#allocation20_spill] sm:$0xff] }
 0x42d   : > { %v3676_v34 = vadd.f32 -0.001, %v1181_v33 }
 0x42e   : > { %v1896_v30 = vadd.f32 %v1895_v48, %v1877_v1  ;;  %v1720_v45 = vadd.f32 %v1719_v50, %v1698_v63 }
 0x42f   : > { %v1183_v18 = vsub.f32 %v3356_v53, %v3676_v34  ;;  %v1184_v63 = vsub.f32 %v3352_v51, %v3676_v34  ;;  %v1186_v48 = vsub.f32 %v3371_v62, %v3676_v34  ;;  %v1188_v49 = vsub.f32 %v3363_v21, %v3676_v34 }
 0x430   : > { %v1897_v27 = vadd.f32 %v1896_v30, %v1879_v23  ;;  %v1189_v30 = vsub.f32 %v3386_v25, %v3676_v34 }
 0x431   : > { %v1885_v20 = vpop.xlane.xlu0 %1884 }
 0x432   : > { %v1898_v22 = vadd.f32 %v1897_v27, %v1881_v58  ;;  %v1331_v6 = vpop.xlane.xlu2 %1330  ;;  %v1721_v58 = vadd.f32 %v1720_v45, %v1700_v37  ;;  %v1185_v37 = vsub.f32 %v3348_v57, %v3676_v34 }
 0x433   : > { %v1346_v19 = vadd.f32 %v1345_v7, %v1331_v6  ;;  %v1704_v15 = vpop.xlane.xlu1 %1703  ;;  %v1190_v7 = vsub.f32 %v3382_v12, %v3676_v34 }
 0x434   : > { %v1899_v56 = vadd.f32 %v1898_v22, %v1883_v35  ;;  %v1722_v55 = vadd.f32 %v1721_v58, %v1702_v9  ;;  %v1187_v9 = vsub.f32 %v3367_v3, %v3676_v34  ;;  %v1191_v22 = vsub.f32 %v3378_v16, %v3676_v34 }
 0x435   : > { %v1347_v36 = vrot.slane %v1346_v19, 4 }
 0x436   : > { %v1900_v47 = vadd.f32 %v1899_v56, %v1885_v20  ;;  %v1723_v54 = vadd.f32 %v1722_v55, %v1704_v15  ;;  %v1193_v56 = vsub.f32 %v3397_v24, %v3676_v34  ;;  %v1196_v20 = vsub.f32 %v3414_v14, %v3676_v34  ;;  %v4287_v15 = vld [vmem:[#allocation22_spill] sm:$0xff]  ;;  %v4292_v55 = vld [vmem:[#allocation29_spill] sm:$0xff] }
 0x437   : > { %v1348_v10 = vadd.f32 %v1347_v36, %v1346_v19  ;;  %v1192_v19 = vsub.f32 %v3401_v46, %v3676_v34  ;;  %v1195_v36 = vsub.f32 %v3418_v11, %v3676_v34 }
 0x438   : > { %v1901_v0 = vrot.slane %v1900_v47, 4 }
 0x439   : > { %v1349_v1 = vrot.slane %v1348_v10, 2 }
 0x43a   : > { %v1902_v60 = vadd.f32 %v1901_v0, %v1900_v47  ;;  %v1708_v40 = vpop.xlane.xlu2 %1707 }
 0x43b   : > { %v1350_v43 = vadd.f32 %v1349_v1, %v1348_v10  ;;  %v1706_v29 = vpop.xlane.xlu1 %1705 }
 0x43c   : > { %v1903_v5 = vrot.slane %v1902_v60, 2  ;;  %v1724_v42 = vadd.f32 %v1723_v54, %v1706_v29  ;;  %v4293_v29 = vld [vmem:[#allocation32_spill] sm:$0xff] }
 0x43d   : > { %v1351_v2 = vrot.slane %v1350_v43, 1 }
 0x43e   : > { %v1904_v23 = vadd.f32 %v1903_v5, %v1902_v60  ;;  %v1725_v59 = vadd.f32 %v1724_v42, %v1708_v40  ;;  %v4289_v60 = vld [vmem:[#allocation23_spill] sm:$0xff]  ;;  %v4295_v40 = vld [vmem:[#allocation38_spill] sm:$0xff] }
 0x43f   : > { %v1352_v31 = vadd.f32 %v1351_v2, %v1350_v43  ;;  %v4290_v43 = vld [vmem:[#allocation55_spill] sm:$0xff]  ;;  %v4291_v2 = vld [vmem:[#allocation26_spill] sm:$0xff] }
 0x440   : > { %v1905_v13 = vrot.slane %v1904_v23, 1  ;;  %v1197_v58 = vsub.f32 %v4290_v43, %v3676_v34  ;;  %v4294_v42 = vld [vmem:[#allocation35_spill] sm:$0xff] }
 0x441   : > { %2379 = vrcp.f32 %v1352_v31 }
 0x442   : > { %v1906_v6 = vadd.f32 %v1905_v13, %v1904_v23 }
 0x444   : > { %2381 = vrcp.f32 %v1906_v6 }
 0x447   : > { %v2380_v35 = vpop.eup %2379 }
 0x448   : > { %v1354_v17 = vmul.f32 %v2380_v35, %v3446_v44  ;;  %v1355_v27 = vmul.f32 %v2380_v35, %v3466_v39  ;;  %v1356_v32 = vmul.f32 %v2380_v35, %v3448_v26  ;;  %v1357_v52 = vmul.f32 %v2380_v35, %v3461_v38  ;;  %v1710_v39 = vpop.xlane.xlu0 %1709  ;;  %v1712_v26 = vpop.xlane.xlu1 %1711 }
 0x449   : > { %v1194_v44 = vsub.f32 %v3393_v28, %v3676_v34  ;;  %v1358_v41 = vmul.f32 %v2380_v35, %v3482_v61  ;;  %v1726_v38 = vadd.f32 %v1725_v59, %v1710_v39  ;;  %v1359_v47 = vmul.f32 %v2380_v35, %v4287_v15  ;;  %v4297_v39 = vld [vmem:[#allocation49_spill] sm:$0xff] }
 0x44a   : > { %v1360_v10 = vmul.f32 %v2380_v35, %v4288_v8  ;;  %v1370_v0 = vadd.f32 0.001, %v1354_v17  ;;  %v3713_v50 = vadd.f32 0.001, %v1355_v27  ;;  %v3715_v1 = vadd.f32 0.001, %v1356_v32 }
 0x44b   : > { %v1361_v4 = vmul.f32 %v2380_v35, %v4289_v60  ;;  %v3718_v61 = vadd.f32 0.001, %v1357_v52  ;;  %v1727_v45 = vadd.f32 %v1726_v38, %v1712_v26  ;;  %v1362_v5 = vmul.f32 %v2380_v35, %v4291_v2  ;;  %v4296_v27 = vld [vmem:[#allocation47_spill] sm:$0xff] }
 0x44c   : > { %v3723_v33 = vadd.f32 0.001, %v1358_v41  ;;  %2383 = vlog2.f32 %v1370_v0  ;;  %v1363_v31 = vmul.f32 %v2380_v35, %v4292_v55  ;;  %v1364_v54 = vmul.f32 %v2380_v35, %v4293_v29  ;;  %v4298_v41 = vld [vmem:[#allocation39_spill] sm:$0xff] }
 0x44d   : > { %v3727_v23 = vadd.f32 0.001, %v1359_v47  ;;  %2385 = vlog2.f32 %v3713_v50  ;;  %v1365_v13 = vmul.f32 %v2380_v35, %v4294_v42  ;;  %v1366_v59 = vmul.f32 %v2380_v35, %v4295_v40  ;;  %v3744_v47 = vpop.eup %2381  ;;  %v4299_v8 = vld [vmem:[#allocation51_spill] sm:$0xff] }
 0x44e   : > { %v3732_v17 = vadd.f32 0.001, %v1360_v10  ;;  %2387 = vlog2.f32 %v3715_v1  ;;  %v1367_v32 = vmul.f32 %v2380_v35, %v4296_v27  ;;  %v3736_v6 = vadd.f32 0.001, %v1361_v4 }
 0x44f   : > { %2389 = vlog2.f32 %v3718_v61  ;;  %v1728_v52 = vrot.slane %v1727_v45, 4  ;;  %v1368_v26 = vmul.f32 %v2380_v35, %v4297_v39  ;;  %v1369_v38 = vmul.f32 %v2380_v35, %v4298_v41 }
 0x450   : > { %v3741_v15 = vadd.f32 0.001, %v1362_v5  ;;  %2391 = vlog2.f32 %v3723_v33  ;;  %v3748_v60 = vadd.f32 0.001, %v1363_v31  ;;  %v3751_v55 = vadd.f32 0.001, %v1364_v54 }
 0x451   : > { %2393 = vlog2.f32 %v3727_v23  ;;  %v1729_v4 = vadd.f32 %v1728_v52, %v1727_v45  ;;  %v3753_v29 = vadd.f32 0.001, %v1365_v13  ;;  %v3755_v35 = vadd.f32 0.001, %v1366_v59  ;;  %v4300_v52 = vld [vmem:[#allocation27_spill] sm:$0xff] }
 0x452   : > { %v2384_v2 = vpop.eup %2383  ;;  %2395 = vlog2.f32 %v3732_v17  ;;  %v3758_v42 = vadd.f32 0.001, %v1367_v32  ;;  %v3761_v39 = vadd.f32 0.001, %v1368_v26  ;;  %v3763_v45 = vadd.f32 0.001, %v1369_v38 }
 0x453   : > { %v2386_v5 = vpop.eup %2385  ;;  %v1387_v40 = vmul.f32 0.6931472, %v2384_v2  ;;  %2397 = vlog2.f32 %v3736_v6  ;;  %v1730_v31 = vrot.slane %v1729_v4, 2  ;;  %v3772_v41 = vmul.f32 %v3744_v47, %v4300_v52 }
 0x454   : > { %v2388_v27 = vpop.eup %2387  ;;  %v1389_v54 = vmul.f32 0.6931472, %v2386_v5  ;;  %2399 = vlog2.f32 %v3741_v15  ;;  %v4306_v14 = vsub.f32 %v4299_v8, %v3676_v34 }
 0x455   : > { %v2390_v13 = vpop.eup %2389  ;;  %v1391_v59 = vmul.f32 0.6931472, %v2388_v27  ;;  %2401 = vlog2.f32 %v3748_v60  ;;  %v1418_v32 = vsub.f32 %v1387_v40, %v1183_v18  ;;  %v1731_v5 = vadd.f32 %v1730_v31, %v1729_v4 }
 0x456   : > { %v2392_v2 = vpop.eup %2391  ;;  %v1393_v26 = vmul.f32 0.6931472, %v2390_v13  ;;  %2403 = vlog2.f32 %v3751_v55  ;;  %v1419_v38 = vsub.f32 %v1389_v54, %v1184_v63 }
 0x457   : > { %v2394_v27 = vpop.eup %2393  ;;  %v1395_v10 = vmul.f32 0.6931472, %v2392_v2  ;;  %2405 = vlog2.f32 %v3753_v29  ;;  %v1420_v53 = vsub.f32 %v1391_v59, %v1185_v37  ;;  %v3782_v18 = vmul.f32 %v1418_v32, %v1370_v0 }
 0x458   : > { %v2396_v40 = vpop.eup %2395  ;;  %v1397_v52 = vmul.f32 0.6931472, %v2394_v27  ;;  %2407 = vlog2.f32 %v3755_v35  ;;  %v1421_v51 = vsub.f32 %v1393_v26, %v1186_v48  ;;  %v3789_v63 = vmul.f32 %v1419_v38, %v3713_v50 }
 0x459   : > { %v2398_v4 = vpop.eup %2397  ;;  %v1399_v31 = vmul.f32 0.6931472, %v2396_v40  ;;  %2409 = vlog2.f32 %v3758_v42  ;;  %v1422_v57 = vsub.f32 %v1395_v10, %v1187_v9  ;;  %v3796_v37 = vmul.f32 %v1420_v53, %v3715_v1 }
 0x45a   : > { %v2400_v0 = vpop.eup %2399  ;;  %v1401_v54 = vmul.f32 0.6931472, %v2398_v4  ;;  %2411 = vlog2.f32 %v3761_v39  ;;  %v1423_v62 = vsub.f32 %v1397_v52, %v1188_v49  ;;  %v3803_v48 = vmul.f32 %v1421_v51, %v3718_v61 }
 0x45b   : > { %v2402_v50 = vpop.eup %2401  ;;  %v1403_v13 = vmul.f32 0.6931472, %v2400_v0  ;;  %2413 = vlog2.f32 %v3763_v45  ;;  %v1424_v3 = vsub.f32 %v1399_v31, %v1189_v30  ;;  %v3810_v9 = vmul.f32 %v1422_v57, %v3723_v33  ;;  %v4301_v33 = vld [vmem:[#allocation12_spill] sm:$0xff] }
 0x45c   : > { %v2404_v1 = vpop.eup %2403  ;;  %v1405_v10 = vmul.f32 0.6931472, %v2402_v50  ;;  %v1425_v21 = vsub.f32 %v1401_v54, %v1190_v7  ;;  %v3816_v49 = vmul.f32 %v1423_v62, %v3727_v23  ;;  %v1732_v61 = vrot.slane %v1731_v5, 1  ;;  %v4307_v62 = vld [vmem:[#allocation13_spill] sm:$0xff]  ;;  %v4308_v50 = vld [vmem:[#allocation16_spill] sm:$0xff] }
 0x45d   : > { %v2406_v59 = vpop.eup %2405  ;;  %v1407_v32 = vmul.f32 0.6931472, %v2404_v1  ;;  %v1426_v25 = vsub.f32 %v1403_v13, %v1191_v22  ;;  %v3822_v30 = vmul.f32 %v1424_v3, %v3732_v17  ;;  %v1909_v2 = vmul.f32 %v3744_v47, %v4301_v33  ;;  %v4302_v17 = vld [vmem:[#allocation44_spill] sm:$0xff]  ;;  %v4313_v33 = vld [vmem:[#allocation9_spill] sm:$0xff] }
 0x45e   : > { %v2408_v26 = vpop.eup %2407  ;;  %v1409_v38 = vmul.f32 0.6931472, %v2406_v59  ;;  %v1427_v12 = vsub.f32 %v1405_v10, %v1192_v19  ;;  %v3830_v7 = vmul.f32 %v1425_v21, %v3736_v6  ;;  %v1733_v23 = vadd.f32 %v1732_v61, %v1731_v5  ;;  %v4311_v21 = vld [vmem:[#allocation24_spill] sm:$0xff] }
 0x45f   : > { %v2410_v27 = vpop.eup %2409  ;;  %v1411_v53 = vmul.f32 0.6931472, %v2408_v26  ;;  %v1428_v16 = vsub.f32 %v1407_v32, %v1193_v56  ;;  %v3836_v22 = vmul.f32 %v1426_v25, %v3741_v15  ;;  %v1910_v40 = vmul.f32 %v3744_v47, %v4302_v17  ;;  %v4303_v15 = vld [vmem:[#allocation30_spill] sm:$0xff]  ;;  %v4312_v32 = vld [vmem:[#allocation43_spill] sm:$0xff] }
 0x460   : > { %v2412_v52 = vpop.eup %2411  ;;  %v1413_v51 = vmul.f32 0.6931472, %v2410_v27  ;;  %v1429_v46 = vsub.f32 %v1409_v38, %v1194_v44  ;;  %v3844_v19 = vmul.f32 %v1427_v12, %v3748_v60  ;;  %2415 = vlog2.f32 %v1733_v23  ;;  %v4304_v60 = vld [vmem:[#allocation19_spill] sm:$0xff]  ;;  %v4314_v26 = vld [vmem:[#allocation14_spill] sm:$0xff]  ;;  %v4315_v38 = vld [vmem:[#allocation33_spill] sm:$0xff] }
 0x461   : > { %v2414_v6 = vpop.eup %2413  ;;  %v1415_v5 = vmul.f32 0.6931472, %v2412_v52  ;;  %v1430_v24 = vsub.f32 %v1411_v53, %v1195_v36  ;;  %v3850_v56 = vmul.f32 %v1428_v16, %v3751_v55  ;;  %v1911_v4 = vmul.f32 %v3744_v47, %v4303_v15  ;;  %v4305_v55 = vld [vmem:[#allocation8_spill] sm:$0xff]  ;;  %v4316_v23 = vld [vmem:[#allocation54_spill] sm:$0xff] }
 0x462   : > { %v1417_v31 = vmul.f32 0.6931472, %v2414_v6  ;;  %v1431_v28 = vsub.f32 %v1413_v51, %v1196_v20  ;;  %v3858_v44 = vmul.f32 %v1429_v46, %v3753_v29  ;;  %v1912_v57 = vmul.f32 %v3744_v47, %v4304_v60  ;;  %v4318_v60 = vld [vmem:[#allocation15_spill] sm:$0xff] }
 0x463   : > { %v1432_v11 = vsub.f32 %v1415_v5, %v1197_v58  ;;  %v3866_v36 = vmul.f32 %v1430_v24, %v3755_v35  ;;  %v1913_v0 = vmul.f32 %v3744_v47, %v4305_v55  ;;  %v3871_v54 = vadd.f32 0.001, %v3772_v41  ;;  %v4309_v41 = vld [vmem:[#allocation18_spill] sm:$0xff] }
 0x464   : > { %v1433_v20 = vsub.f32 %v1417_v31, %v4306_v14  ;;  %v3877_v29 = vmul.f32 %v1431_v28, %v3758_v42  ;;  %v1914_v43 = vmul.f32 %v3744_v47, %v4307_v62  ;;  %v3881_v58 = vadd.f32 0.001, %v1909_v2  ;;  %v4310_v42 = vld [vmem:[#allocation21_spill] sm:$0xff]  ;;  %v4317_v31 = vld [vmem:[#allocation10_spill] sm:$0xff] }
 0x465   : > { %v3884_v35 = vmul.f32 %v1432_v11, %v3761_v39  ;;  %v1915_v13 = vmul.f32 %v3744_v47, %v4308_v50  ;;  %v1916_v3 = vmul.f32 %v3744_v47, %v4309_v41  ;;  %v3890_v1 = vadd.f32 0.001, %v1910_v40  ;;  %v4319_v11 = vld [vmem:[#allocation11_spill] sm:$0xff] }
 0x466   : > { %v2416_v34 = vpop.eup %2415  ;;  %v3893_v8 = vmul.f32 %v1433_v20, %v3763_v45  ;;  %v1917_v10 = vmul.f32 %v3744_v47, %v4310_v42  ;;  %v1918_v61 = vmul.f32 %v3744_v47, %v4311_v21  ;;  %v1927_v39 = vadd.f32 0.001, %v1911_v4  ;;  %v4320_v20 = vld [vmem:[#allocation25_spill] sm:$0xff] }
 0x467   : > { %v1735_v59 = vmul.f32 0.6931472, %v2416_v34  ;;  %v1919_v25 = vmul.f32 %v3744_v47, %v4312_v32  ;;  %v1920_v2 = vmul.f32 %v3744_v47, %v4313_v33  ;;  %2417 = vlog2.f32 %v3871_v54 }
 0x468   : > { %v1921_v45 = vmul.f32 %v3744_v47, %v4314_v26  ;;  %v1922_v12 = vmul.f32 %v3744_v47, %v4315_v38  ;;  %v1923_v27 = vmul.f32 %v3744_v47, %v4316_v23  ;;  %2419 = vlog2.f32 %v3881_v58 }
 0x469   : > { %v3911_v53 = vadd.f32 -0.001, %v1735_v59  ;;  %v3913_v16 = vadd.f32 0.001, %v1912_v57  ;;  %v3915_v17 = vadd.f32 0.001, %v1913_v0  ;;  %2421 = vlog2.f32 %v3890_v1 }
 0x46a   : > { %v3918_v40 = vadd.f32 0.001, %v1914_v43  ;;  %v3920_v52 = vadd.f32 0.001, %v1915_v13  ;;  %v3922_v51 = vadd.f32 0.001, %v1916_v3  ;;  %2423 = vlog2.f32 %v1927_v39 }
 0x46b   : > { %v3924_v46 = vadd.f32 0.001, %v1917_v10  ;;  %v3926_v47 = vadd.f32 0.001, %v1918_v61  ;;  %v3928_v6 = vadd.f32 0.001, %v1919_v25  ;;  %v1737_v28 = vsub.f32 %v4317_v31, %v3911_v53 }
 0x46c   : > { %v3930_v5 = vadd.f32 0.001, %v1920_v2  ;;  %v3932_v24 = vadd.f32 0.001, %v1921_v45  ;;  %v3934_v15 = vadd.f32 0.001, %v1922_v12  ;;  %v1738_v57 = vsub.f32 %v4318_v60, %v3911_v53 }
 0x46d   : > { %v2418_v4 = vpop.eup %2417  ;;  %v1739_v55 = vsub.f32 %v4319_v11, %v3911_v53  ;;  %v3942_v0 = vadd.f32 0.001, %v1923_v27  ;;  %v1740_v62 = vsub.f32 %v4320_v20, %v3911_v53  ;;  %v4321_v43 = vld [vmem:[#allocation28_spill] sm:$0xff]  ;;  %v4322_v13 = vld [vmem:[#allocation31_spill] sm:$0xff]  ;;  %v4323_v3 = vld [vmem:[#allocation34_spill] sm:$0xff]  ;;  %2425 = vlog2.f32 %v3913_v16 }
 0x46e   : > { %v2420_v14 = vpop.eup %2419  ;;  %v1741_v50 = vsub.f32 %v4321_v43, %v3911_v53  ;;  %v1742_v41 = vsub.f32 %v4322_v13, %v3911_v53  ;;  %v1743_v34 = vsub.f32 %v4323_v3, %v3911_v53  ;;  %v4324_v10 = vld [vmem:[#allocation37_spill] sm:$0xff]  ;;  %v1941_v61 = vmul.f32 0.6931472, %v2418_v4  ;;  %v4325_v25 = vld [vmem:[#allocation40_spill] sm:$0xff]  ;;  %v4328_v31 = vld [vmem:[#allocation46_spill] sm:$0xff] }
 0x46f   : > { %v2422_v42 = vpop.eup %2421  ;;  %v1744_v21 = vsub.f32 %v4324_v10, %v3911_v53  ;;  %v1943_v59 = vmul.f32 0.6931472, %v2420_v14  ;;  %v1745_v33 = vsub.f32 %v4325_v25, %v3911_v53  ;;  %v4326_v2 = vld [vmem:[#allocation41_spill] sm:$0xff]  ;;  %2427 = vlog2.f32 %v3915_v17 }
 0x470   : > { %v2424_v32 = vpop.eup %2423  ;;  %v1746_v26 = vsub.f32 %v4326_v2, %v3911_v53  ;;  %v1945_v45 = vmul.f32 0.6931472, %v2422_v42  ;;  %2429 = vlog2.f32 %v3918_v40  ;;  %v1972_v12 = vsub.f32 %v1941_v61, %v1737_v28  ;;  %v4327_v27 = vld [vmem:[#allocation17_spill] sm:$0xff] }
 0x471   : > { %v1947_v38 = vmul.f32 0.6931472, %v2424_v32  ;;  %v1973_v23 = vsub.f32 %v1943_v59, %v1738_v57  ;;  %v1747_v4 = vsub.f32 %v4327_v27, %v3911_v53  ;;  %v1748_v60 = vsub.f32 %v4328_v31, %v3911_v53  ;;  %v4329_v13 = vld [vmem:[#allocation53_spill] sm:$0xff]  ;;  %v4330_v57 = vld [vmem:[#allocation36_spill] sm:$0xff] }
 0x472   : > { %2431 = vlog2.f32 %v3920_v52  ;;  %v1974_v11 = vsub.f32 %v1945_v45, %v1739_v55  ;;  %v1988_v20 = vmul.f32 %v1972_v12, %v3871_v54  ;;  %v1749_v28 = vsub.f32 %v4329_v13, %v3911_v53 }
 0x473   : > { %2433 = vlog2.f32 %v3922_v51  ;;  %v1975_v14 = vsub.f32 %v1947_v38, %v1740_v62  ;;  %v1989_v43 = vmul.f32 %v1973_v23, %v3881_v58  ;;  %v1750_v3 = vsub.f32 %v4330_v57, %v3911_v53  ;;  %v2426_v10 = vpop.eup %2425  ;;  %v4331_v58 = vld [vmem:[#allocation50_spill] sm:$0xff] }
 0x474   : > { %2435 = vlog2.f32 %v3924_v46  ;;  %v1990_v42 = vmul.f32 %v1974_v11, %v3890_v1  ;;  %v2004_v62 = vadd.f32 %v1988_v20, %v3782_v18  ;;  %v1751_v59 = vsub.f32 %v4331_v58, %v3911_v53  ;;  %v4332_v18 = vld [vmem:[#allocation48_spill] sm:$0xff] }
 0x475   : > { %2437 = vlog2.f32 %v3926_v47  ;;  %v1991_v55 = vmul.f32 %v1975_v14, %v1927_v39  ;;  %v2005_v54 = vadd.f32 %v1989_v43, %v3789_v63  ;;  %v2428_v61 = vpop.eup %2427  ;;  %v1949_v32 = vmul.f32 0.6931472, %v2426_v10 }
 0x476   : > { %2439 = vlog2.f32 %v3928_v6  ;;  %v2006_v25 = vadd.f32 %v1990_v42, %v3796_v37  ;;  %v2430_v2 = vpop.eup %2429  ;;  %v1951_v45 = vmul.f32 0.6931472, %v2428_v61  ;;  %v1752_v63 = vsub.f32 %v4332_v18, %v3911_v53 }
 0x477   : > { %2441 = vlog2.f32 %v3930_v5  ;;  %v2007_v1 = vadd.f32 %v1991_v55, %v3803_v48  ;;  %v2020_v39 = vadd.f32 %v2005_v54, %v2004_v62  ;;  %v1953_v12 = vmul.f32 0.6931472, %v2430_v2 }
 0x478   : > { %v2432_v38 = vpop.eup %2431  ;;  %2443 = vlog2.f32 %v3932_v24  ;;  %v1976_v23 = vsub.f32 %v1949_v32, %v1741_v50  ;;  %v1977_v37 = vsub.f32 %v1951_v45, %v1742_v41 }
 0x479   : > { %v2434_v27 = vpop.eup %2433  ;;  %v1955_v11 = vmul.f32 0.6931472, %v2432_v38  ;;  %2445 = vlog2.f32 %v3934_v15  ;;  %v2021_v14 = vadd.f32 %v2020_v39, %v2006_v25  ;;  %v1978_v48 = vsub.f32 %v1953_v12, %v1743_v34 }
 0x47a   : > { %v2436_v20 = vpop.eup %2435  ;;  %v1957_v43 = vmul.f32 0.6931472, %v2434_v27  ;;  %2447 = vlog2.f32 %v3942_v0  ;;  %v1992_v13 = vmul.f32 %v1976_v23, %v3913_v16  ;;  %v1993_v62 = vmul.f32 %v1977_v37, %v3915_v17 }
 0x47b   : > { %v2438_v42 = vpop.eup %2437  ;;  %v1959_v10 = vmul.f32 0.6931472, %v2436_v20  ;;  %v1979_v55 = vsub.f32 %v1955_v11, %v1744_v21  ;;  %v2022_v54 = vadd.f32 %v2021_v14, %v2007_v1  ;;  %v1994_v32 = vmul.f32 %v1978_v48, %v3918_v40 }
 0x47c   : > { %v2440_v50 = vpop.eup %2439  ;;  %v1961_v61 = vmul.f32 0.6931472, %v2438_v42  ;;  %v1980_v58 = vsub.f32 %v1957_v43, %v1745_v33  ;;  %v2008_v41 = vadd.f32 %v1992_v13, %v3810_v9  ;;  %v2009_v16 = vadd.f32 %v1993_v62, %v3816_v49 }
 0x47d   : > { %v2442_v25 = vpop.eup %2441  ;;  %v1963_v2 = vmul.f32 0.6931472, %v2440_v50  ;;  %v1981_v45 = vsub.f32 %v1959_v10, %v1746_v26  ;;  %v1995_v34 = vmul.f32 %v1979_v55, %v3920_v52  ;;  %v2010_v1 = vadd.f32 %v1994_v32, %v3822_v30 }
 0x47e   : > { %v2444_v39 = vpop.eup %2443  ;;  %v1965_v38 = vmul.f32 0.6931472, %v2442_v25  ;;  %v1982_v21 = vsub.f32 %v1961_v61, %v1747_v4  ;;  %v1996_v17 = vmul.f32 %v1980_v58, %v3922_v51  ;;  %v2023_v11 = vadd.f32 %v2022_v54, %v2008_v41 }
 0x47f   : > { %v2446_v18 = vpop.eup %2445  ;;  %v1967_v33 = vmul.f32 0.6931472, %v2444_v39  ;;  %v1983_v9 = vsub.f32 %v1963_v2, %v1748_v60  ;;  %v1997_v40 = vmul.f32 %v1981_v45, %v3924_v46  ;;  %v2011_v26 = vadd.f32 %v1995_v34, %v3830_v7 }
 0x480   : > { %v2448_v52 = vpop.eup %2447  ;;  %v1969_v12 = vmul.f32 0.6931472, %v2446_v18  ;;  %v1984_v49 = vsub.f32 %v1965_v38, %v1749_v28  ;;  %v1998_v23 = vmul.f32 %v1982_v21, %v3926_v47  ;;  %v2012_v4 = vadd.f32 %v1996_v17, %v3836_v22 }
 0x481   : > { %v1971_v51 = vmul.f32 0.6931472, %v2448_v52  ;;  %v1985_v30 = vsub.f32 %v1967_v33, %v1750_v3  ;;  %v1999_v27 = vmul.f32 %v1983_v9, %v3928_v6  ;;  %v2013_v31 = vadd.f32 %v1997_v40, %v3844_v19 }
 0x482   : > { %v1986_v60 = vsub.f32 %v1969_v12, %v1751_v59  ;;  %v2000_v46 = vmul.f32 %v1984_v49, %v3930_v5  ;;  %v2014_v7 = vadd.f32 %v1998_v23, %v3850_v56  ;;  %v2024_v57 = vadd.f32 %v2023_v11, %v2009_v16 }
 0x483   : > { %v1987_v28 = vsub.f32 %v1971_v51, %v1752_v63  ;;  %v2001_v47 = vmul.f32 %v1985_v30, %v3932_v24  ;;  %v2015_v22 = vadd.f32 %v1999_v27, %v3858_v44 }
 0x484   : > { %v2002_v37 = vmul.f32 %v1986_v60, %v3934_v15  ;;  %v2016_v53 = vadd.f32 %v2000_v46, %v3866_v36  ;;  %v2025_v56 = vadd.f32 %v2024_v57, %v2010_v1 }
 0x485   : > { %v2003_v6 = vmul.f32 %v1987_v28, %v3942_v0  ;;  %v2017_v19 = vadd.f32 %v2001_v47, %v3877_v29 }
 0x486   : > { %v2018_v5 = vadd.f32 %v2002_v37, %v3884_v35  ;;  %v2026_v59 = vadd.f32 %v2025_v56, %v2011_v26 }
 0x487   : > { %v2019_v3 = vadd.f32 %v2003_v6, %v3893_v8 }
 0x488   : > { %v2027_v24 = vadd.f32 %v2026_v59, %v2012_v4 }
 0x48a   : > { %v2028_v63 = vadd.f32 %v2027_v24, %v2013_v31 }
 0x48c   : > { %v2029_v44 = vadd.f32 %v2028_v63, %v2014_v7 }
 0x48e   : > { %v2030_v14 = vadd.f32 %v2029_v44, %v2015_v22 }
 0x490   : > { %v2031_v15 = vadd.f32 %v2030_v14, %v2016_v53 }
 0x492   : > { %v2032_v20 = vadd.f32 %v2031_v15, %v2017_v19 }
 0x494   : > { %v2033_v36 = vadd.f32 %v2032_v20, %v2018_v5 }
 0x496   : > { %v2034_v43 = vadd.f32 %v2033_v36, %v2019_v3 }
 0x498   : > { %v2035_v48 = vrot.slane %v2034_v43, 4 }
 0x49a   : > { %v2036_v0 = vadd.f32 %v2035_v48, %v2034_v43 }
 0x49c   : > { %v2037_v13 = vrot.slane %v2036_v0, 2 }
 0x49e   : > { %v2038_v29 = vadd.f32 %v2037_v13, %v2036_v0 }
 0x4a0   : > { %v2039_v35 = vrot.slane %v2038_v29, 1 }
 0x4a2   : > { %v2040_v8 = vadd.f32 %v2039_v35, %v2038_v29 }
 0x4a4   : > { %2041 = vst [vmem:[%s311_s7] sm:$0x1] %v2040_v8 }
 0x4a5 PF: > { %p19_p8 = scmp.ge.s32.totalorder %s2608_s26, 4   ;;  %s4333_s21 = smov %s2539_s22 }
 0x4a6   : > { %s4334_s22 = smov %s2543_s23  ;;  %s4335_s23 = smov %s2618_s29 }
 0x4a7   : > { %s4336_s24 = smov %s2608_s26  ;;  %21 = sbr.rel (!%p19_p8) target bundleno = 7 (0x7), region = 101 }
 0x4ac   :  { %2059 = vsyncpa [#allocation3], 1 }
 0x4ad   :  { %2061 = vsyncpa [#allocation3 + $0x1], 1 }
 0x4ae   :  { %2062 = vsyncpa [#allocation5], 1 }
 0x4af   :  { %2064 = vsyncpa [#allocation5 + $0x1], 1 }

</bundles_post_ra>
